<compile_context>
chip_gen: v5e
topology: v5e:2x2
jax: 0.10.0
libtpu: 0.0.40
codegen_flags: <defaults>
</compile_context>

<pallas_src>
import math
from functools import partial

import numpy as np
import jax
import jax.numpy as jnp
from jax.experimental import pallas as pl
from jax.experimental.pallas import tpu as pltpu

LANE = 128


# ----------------------------------------------------------------------------
# Pallas kernel: hoisted input projection + serial LSTM recurrence (full-vreg
# gate nonlinearities, roll-based block alignment) + batched MLP head +
# log_softmax over the time axis, all in b-major (B, T, ...) layout.
# ----------------------------------------------------------------------------
def lstm_mlp_kernel(embs_ref,    # (B*T, E)  f32, row = b*T + t
                    wih_ref,     # (E, 4H)   f32  (transposed PyTorch weight_ih)
                    whh_ref,     # (4H, 4H)  f32  (transposed weight_hh, rows >= H zero)
                    b_ref,       # (1, 4H)   f32  (b_ih + b_hh)
                    w1_ref,      # (4H, HD)  f32  (transposed mlp linear1, rows >= H zero)
                    b1_ref,      # (1, HD)   f32
                    w2_ref,      # (HD, Vp)  f32  (transposed, vocab lane-padded)
                    b2_ref,      # (1, Vp)   f32  (lane-padded)
                    out_ref,     # (B, T, Vp) f32 log-probs (softmax over T axis)
                    xproj_ref,   # (B, T, 4H) f32 VMEM scratch: staged input projection
                    hall_ref,    # (B, T, 4H) f32 VMEM scratch: per-step hidden states
                    *, B, T):
    H4 = whh_ref.shape[0]
    H = H4 // 4

    # ---- 1. Hoisted input projection: one batched MXU matmul + fused bias,
    # staged into VMEM in (B, T, 4H) order (reshape is layout-preserving when
    # T % 8 == 0; otherwise still correct, just a relayout copy).
    xproj = (jnp.dot(embs_ref[...], wih_ref[...],
                     preferred_element_type=jnp.float32) + b_ref[...])
    xproj_ref[...] = xproj.reshape(B, T, H4)

    # ---- 2. Serial recurrence: only h @ W_hh + gate math on the critical path.
    # T is static at trace time -> Python loop == fully unrolled.
    # h/c are carried (B, 4H)-wide; only lanes [0, H) are meaningful.  W_hh is
    # zero below row H, so the junk lanes of h contribute exactly zero.
    whh = whh_ref[...]
    h = jnp.zeros((B, H4), jnp.float32)
    c = jnp.zeros((B, H4), jnp.float32)
    for t in range(T):
        gates = xproj_ref[:, t, :] + jnp.dot(h, whh,
                                             preferred_element_type=jnp.float32)
        # PyTorch gate lane blocks: [ i | f | g | o ].
        sig = jax.nn.sigmoid(gates)      # full-vreg: [ i | f | s(g) | o ]
        tnh = jnp.tanh(gates)            # full-vreg: [ . | .  |  g   | . ]
        # Align f / g / o blocks with lane block 0 via XLU rotations
        # (jnp.roll semantics: output[l] = input[(l - shift) mod 4H]).
        f_al = pltpu.roll(sig, shift=3 * H, axis=1)   # lanes [0,H) = f
        o_al = pltpu.roll(sig, shift=1 * H, axis=1)   # lanes [0,H) = o
        g_al = pltpu.roll(tnh, shift=2 * H, axis=1)   # lanes [0,H) = g
        c = f_al * c + sig * g_al        # lanes [0,H): f*c + i*g  (rest junk, bounded)
        h = o_al * jnp.tanh(c)           # lanes [0,H): o * tanh(c)
        hall_ref[:, t, :] = h

    # ---- 3. MLP head batched over all B*T rows, off the critical path.
    # (dropout=0.0 in the reference -> identity.)  W1 is zero below row H, so
    # the junk lanes [H, 4H) of the stored hidden states drop out exactly.
    hf = hall_ref[...].reshape(B * T, H4)
    z = jnp.maximum(hf, 0.0)
    z = jnp.dot(z, w1_ref[...], preferred_element_type=jnp.float32) + b1_ref[...]
    z = jnp.maximum(z, 0.0)
    logits = (jnp.dot(z, w2_ref[...], preferred_element_type=jnp.float32)
              + b2_ref[...]).reshape(B, T, -1)

    # ---- 4. log_softmax over the TIME axis (axis=1 of (B, T, Vp), i.e. a
    # sublane reduction) == dim=1 of the PyTorch (B, T, V) log_softmax.
    m = jnp.max(logits, axis=1, keepdims=True)
    shifted = logits - m
    lse = jnp.log(jnp.sum(jnp.exp(shifted), axis=1, keepdims=True))
    out_ref[...] = shifted - lse          # lane-dense store (Vp % 128 == 0)


def run_lstm_core(embs_flat, B, T, wih_T, whh_pad, b2d, w1_pad, b1_2d, w2_T, b2_2d):
    H4 = whh_pad.shape[0]
    Vp = w2_T.shape[1]
    vmem = pl.BlockSpec(memory_space=pltpu.MemorySpace.VMEM)
    return pl.pallas_call(
        partial(lstm_mlp_kernel, B=B, T=T),
        out_shape=jax.ShapeDtypeStruct((B, T, Vp), jnp.float32),
        in_specs=[vmem] * 8,
        out_specs=vmem,
        scratch_shapes=[pltpu.VMEM((B, T, H4), jnp.float32),   # staged x-projection
                        pltpu.VMEM((B, T, H4), jnp.float32)],  # hidden states
    )(embs_flat, wih_T, whh_pad, b2d, w1_pad, b1_2d, w2_T, b2_2d)


@jax.jit
def _forward_core(w_ids, emb_table, wih_T, whh_pad, b2d, w1_pad, b1_2d, w2_T, b2_2d):
    B, T = w_ids.shape
    # Gather straight into the dense 2-D (B*T, E) slab the kernel consumes
    # (row = b*T + t): no transpose, no in-kernel reshape of a 3-D tensor.
    embs_flat = jnp.take(emb_table, w_ids.reshape(-1), axis=0)
    return run_lstm_core(embs_flat, B, T, wih_T, whh_pad, b2d, w1_pad, b1_2d,
                         w2_T, b2_2d)                      # (B, T, Vp)


# ----------------------------------------------------------------------------
# Module-equivalent wrapper (parameter setup + padding/gather glue in JAX).
# ----------------------------------------------------------------------------
class LSTMPallas:
    def __init__(self, vocab_size, embedding_dim, hidden_dim=10, hidden_size=10,
                 context_size=3, num_layers=1, dropout=0.0, key=None):
        assert num_layers == 1, "only num_layers=1 implemented"
        self.vocab_size = vocab_size
        self.embedding_dim = embedding_dim
        self.hidden_dim = hidden_dim
        self.hidden_size = hidden_size
        self.padding_idx = vocab_size

        key = jax.random.PRNGKey(0) if key is None else key
        ks = jax.random.split(key, 9)
        V, E, H, HD = vocab_size, embedding_dim, hidden_size, hidden_dim

        # Embedding table: N(0,1) rows, padding row zeroed (like nn.Embedding).
        emb = jax.random.normal(ks[0], (V + 1, E), jnp.float32)
        self.emb_table = emb.at[self.padding_idx].set(0.0)

        # LSTM params, uniform(-1/sqrt(H), 1/sqrt(H)) like PyTorch.
        k = 1.0 / math.sqrt(H)
        u = lambda kk, shp: jax.random.uniform(kk, shp, jnp.float32, -k, k)
        self.w_ih = u(ks[1], (4 * H, E))
        self.w_hh = u(ks[2], (4 * H, H))
        self.b_ih = u(ks[3], (4 * H,))
        self.b_hh = u(ks[4], (4 * H,))

        # MLP: Linear(H, HD), Linear(HD, V)
        k1 = 1.0 / math.sqrt(H)
        self.w1 = jax.random.uniform(ks[5], (HD, H), jnp.float32, -k1, k1)
        self.b1 = jax.random.uniform(ks[6], (HD,), jnp.float32, -k1, k1)
        k2 = 1.0 / math.sqrt(HD)
        self.w2 = jax.random.uniform(ks[7], (V, HD), jnp.float32, -k2, k2)
        self.b2 = jax.random.uniform(ks[8], (V,), jnp.float32, -k2, k2)

        # Precomputed kernel-layout parameters, built ONCE here:
        #  * W_hh transposed and zero-row-padded to (4H, 4H) so the 4H-wide
        #    carried hidden state multiplies with no lane slicing.
        #  * W1 transposed and zero-row-padded to (4H, HD) for the same reason.
        #  * Vocab dim lane-padded to a multiple of 128.
        # TODO(synk): store large weights in bf16 on v6e/v7x once V/HD scale up.
        self.Vp = ((V + LANE - 1) // LANE) * LANE
        w2p = jnp.zeros((self.Vp, HD), jnp.float32).at[:V, :].set(self.w2)
        b2p = jnp.zeros((self.Vp,), jnp.float32).at[:V].set(self.b2)
        self._wih_T = jnp.asarray(self.w_ih.T)                               # (E, 4H)
        self._whh_pad = (jnp.zeros((4 * H, 4 * H), jnp.float32)
                         .at[:H, :].set(self.w_hh.T))                        # (4H, 4H)
        self._b_fused = (self.b_ih + self.b_hh).reshape(1, -1)               # (1, 4H)
        self._w1_pad = (jnp.zeros((4 * H, HD), jnp.float32)
                        .at[:H, :].set(self.w1.T))                           # (4H, HD)
        self._b1_2d = self.b1.reshape(1, -1)                                 # (1, HD)
        self._w2p_T = jnp.asarray(w2p.T)                                     # (HD, Vp)
        self._b2p_2d = b2p.reshape(1, -1)                                    # (1, Vp)

        # TODO(synk): the reference forward calls self.dropout which is never
        # defined in its __init__ (would raise AttributeError); with dropout=0.0
        # it is treated as identity here.

    def forward(self, inputs):
        # inputs: list of 1-D int32 arrays of varying length (token ids).
        # NOTE: callers get the best TPU utilization by batching >= 8 sequences
        # per call (fills the 8 sublanes of every vreg / MXU pass).
        B = len(inputs)
        T = max(int(s.shape[0]) for s in inputs)
        # Padded id matrix built host-side in one shot (no per-row device ops).
        w_np = np.full((B, T), self.padding_idx, dtype=np.int32)
        for i, seq in enumerate(inputs):
            n = int(seq.shape[0])
            w_np[i, :n] = np.asarray(seq, dtype=np.int32)
        w = jnp.asarray(w_np)

        # (B, T, Vp) log-probs; lane padding sliced away below.
        log_probs = _forward_core(
            w, self.emb_table,
            self._wih_T, self._whh_pad, self._b_fused,
            self._w1_pad, self._b1_2d, self._w2p_T, self._b2p_2d,
        )
        V = self.vocab_size
        # TODO(synk): like the PyTorch reference run on padded tensors, padded
        # timesteps (of shorter sequences) participate in the time-axis softmax
        # normalization.
        return [log_probs[i, : inputs[i].shape[0], :V] for i in range(B)]

    # Pure-JAX reference of the same math (for a silent sanity check).
    def _forward_ref(self, inputs):
        B = len(inputs)
        T = max(int(s.shape[0]) for s in inputs)
        w = jnp.full((B, T), self.padding_idx, dtype=jnp.int32)
        for i, seq in enumerate(inputs):
            w = w.at[i, : seq.shape[0]].set(seq.astype(jnp.int32))
        embs = self.emb_table[w]
        H = self.hidden_size
        h = jnp.zeros((B, H), jnp.float32)
        c = jnp.zeros((B, H), jnp.float32)
        outs = []
        for t in range(T):
            g = embs[:, t, :] @ self.w_ih.T + h @ self.w_hh.T + self.b_ih + self.b_hh
            i_g = jax.nn.sigmoid(g[:, 0 * H:1 * H])
            f_g = jax.nn.sigmoid(g[:, 1 * H:2 * H])
            g_g = jnp.tanh(g[:, 2 * H:3 * H])
            o_g = jax.nn.sigmoid(g[:, 3 * H:4 * H])
            c = f_g * c + i_g * g_g
            h = o_g * jnp.tanh(c)
            z = jnp.maximum(h, 0.0) @ self.w1.T + self.b1
            outs.append(jnp.maximum(z, 0.0) @ self.w2.T + self.b2)
        logits = jnp.stack(outs, axis=1)                  # (B, T, V)
        log_probs = jax.nn.log_softmax(logits, axis=1)    # dim=1 like the reference
        return [log_probs[i, : inputs[i].shape[0]] for i in range(B)]


if __name__ == "__main__":
    vocab_size, embedding_dim, hidden_size, hidden_dim = 32, 16, 32, 32
    model = LSTMPallas(vocab_size, embedding_dim,
                       hidden_dim=hidden_dim, hidden_size=hidden_size)

    key = jax.random.PRNGKey(0)
    k1, k2 = jax.random.split(key)
    inputs = [
        jax.random.randint(k1, (8,), 0, vocab_size, dtype=jnp.int32),
        jax.random.randint(k2, (5,), 0, vocab_size, dtype=jnp.int32),
    ]

    outs = model.forward(inputs)
    outs = [jax.block_until_ready(o) for o in outs]

    refs = model._forward_ref(inputs)
    for o, r in zip(outs, refs):
        assert o.shape == r.shape
        assert jnp.max(jnp.abs(o - r)) < 1e-4, float(jnp.max(jnp.abs(o - r)))

    print("KERNEL_OK")
</pallas_src>

<mosaic_0001>
module attributes {stable_mosaic.version = 11 : i64} {
  func.func @lstm_mlp_kernel(%arg0: memref<16x16xf32, #tpu.memory_space<vmem>>, %arg1: memref<16x128xf32, #tpu.memory_space<vmem>>, %arg2: memref<128x128xf32, #tpu.memory_space<vmem>>, %arg3: memref<1x128xf32, #tpu.memory_space<vmem>>, %arg4: memref<128x32xf32, #tpu.memory_space<vmem>>, %arg5: memref<1x32xf32, #tpu.memory_space<vmem>>, %arg6: memref<32x128xf32, #tpu.memory_space<vmem>>, %arg7: memref<1x128xf32, #tpu.memory_space<vmem>>, %arg8: memref<2x8x128xf32, #tpu.memory_space<vmem>>, %arg9: memref<2x8x128xf32, #tpu.memory_space<vmem>>, %arg10: memref<2x8x128xf32, #tpu.memory_space<vmem>>) attributes {dimension_semantics = [], scalar_prefetch = 0 : i64, scratch_operands = 2 : i64, tpu.core_type = #tpu.core_type<tc>} {
    %c0 = arith.constant 0 : index
    %c0_0 = arith.constant 0 : index
    %0 = vector.load %arg0[%c0, %c0_0] : memref<16x16xf32, #tpu.memory_space<vmem>>, vector<16x16xf32>
    %c0_1 = arith.constant 0 : index
    %c0_2 = arith.constant 0 : index
    %1 = vector.load %arg1[%c0_1, %c0_2] : memref<16x128xf32, #tpu.memory_space<vmem>>, vector<16x128xf32>
    %cst = arith.constant dense<0.000000e+00> : vector<16x128xf32>
    %2 = tpu.matmul %0, %1, %cst {dimension_numbers = #tpu.dot_dimension_numbers<[1], [0], [0], [1], [0, 0, 1, 1], [], []>} : vector<16x16xf32>, vector<16x128xf32>, vector<16x128xf32> -> vector<16x128xf32>
    %c0_3 = arith.constant 0 : index
    %c0_4 = arith.constant 0 : index
    %3 = vector.load %arg3[%c0_3, %c0_4] : memref<1x128xf32, #tpu.memory_space<vmem>>, vector<1x128xf32>
    %4 = vector.broadcast %3 : vector<1x128xf32> to vector<16x128xf32>
    %5 = arith.addf %2, %4 : vector<16x128xf32>
    %6 = vector.shape_cast %5 : vector<16x128xf32> to vector<2x8x128xf32>
    %c0_5 = arith.constant 0 : index
    %c0_6 = arith.constant 0 : index
    %c0_7 = arith.constant 0 : index
    %7 = vector.load %arg9[%c0_5, %c0_6, %c0_7] : memref<2x8x128xf32, #tpu.memory_space<vmem>>, vector<2x8x128xf32>
    tpu.vector_store %arg9[%c0_5, %c0_6, %c0_7], %6 {strides = array<i32>} : memref<2x8x128xf32, #tpu.memory_space<vmem>>, vector<2x8x128xf32>,
    %c0_8 = arith.constant 0 : index
    %c0_9 = arith.constant 0 : index
    %8 = vector.load %arg2[%c0_8, %c0_9] : memref<128x128xf32, #tpu.memory_space<vmem>>, vector<128x128xf32>
    %cst_10 = arith.constant 0.000000e+00 : f32
    %9 = vector.broadcast %cst_10 : f32 to vector<2x128xf32>
    %cst_11 = arith.constant 0.000000e+00 : f32
    %10 = vector.broadcast %cst_11 : f32 to vector<2x128xf32>
    %c0_12 = arith.constant 0 : index
    %c0_13 = arith.constant 0 : index
    %c0_14 = arith.constant 0 : index
    %11 = vector.load %arg9[%c0_12, %c0_13, %c0_14] : memref<2x8x128xf32, #tpu.memory_space<vmem>>, vector<2x1x128xf32>
    %12 = vector.shape_cast %11 : vector<2x1x128xf32> to vector<2x128xf32>
    %cst_15 = arith.constant dense<0.000000e+00> : vector<2x128xf32>
    %13 = tpu.matmul %9, %8, %cst_15 {dimension_numbers = #tpu.dot_dimension_numbers<[1], [0], [0], [1], [0, 0, 1, 1], [], []>} : vector<2x128xf32>, vector<128x128xf32>, vector<2x128xf32> -> vector<2x128xf32>
    %14 = arith.addf %12, %13 : vector<2x128xf32>
    %15 = arith.negf %14 : vector<2x128xf32>
    %16 = math.exp %15 : vector<2x128xf32>
    %cst_16 = arith.constant 1.000000e+00 : f32
    %17 = vector.broadcast %cst_16 : f32 to vector<2x128xf32>
    %18 = arith.addf %17, %16 : vector<2x128xf32>
    %19 = arith.divf %17, %18 : vector<2x128xf32>
    %20 = math.tanh %14 : vector<2x128xf32>
    %c96_i32 = arith.constant 96 : i32
    %21 = tpu.dynamic_rotate %19 by %c96_i32 dim 1 : vector<2x128xf32>, i32 -> vector<2x128xf32>
    %c32_i32 = arith.constant 32 : i32
    %22 = tpu.dynamic_rotate %19 by %c32_i32 dim 1 : vector<2x128xf32>, i32 -> vector<2x128xf32>
    %c64_i32 = arith.constant 64 : i32
    %23 = tpu.dynamic_rotate %20 by %c64_i32 dim 1 : vector<2x128xf32>, i32 -> vector<2x128xf32>
    %24 = arith.mulf %21, %10 : vector<2x128xf32>
    %25 = arith.mulf %19, %23 : vector<2x128xf32>
    %26 = arith.addf %24, %25 : vector<2x128xf32>
    %27 = math.tanh %26 : vector<2x128xf32>
    %28 = arith.mulf %22, %27 : vector<2x128xf32>
    %c0_17 = arith.constant 0 : index
    %c0_18 = arith.constant 0 : index
    %c0_19 = arith.constant 0 : index
    %29 = vector.load %arg10[%c0_17, %c0_18, %c0_19] : memref<2x8x128xf32, #tpu.memory_space<vmem>>, vector<2x1x128xf32>
    %30 = vector.shape_cast %29 : vector<2x1x128xf32> to vector<2x128xf32>
    %31 = vector.shape_cast %28 : vector<2x128xf32> to vector<2x1x128xf32>
    tpu.vector_store %arg10[%c0_17, %c0_18, %c0_19], %31 {strides = array<i32>} : memref<2x8x128xf32, #tpu.memory_space<vmem>>, vector<2x1x128xf32>,
    %c0_20 = arith.constant 0 : index
    %c1 = arith.constant 1 : index
    %c0_21 = arith.constant 0 : index
    %32 = vector.load %arg9[%c0_20, %c1, %c0_21] : memref<2x8x128xf32, #tpu.memory_space<vmem>>, vector<2x1x128xf32>
    %33 = vector.shape_cast %32 : vector<2x1x128xf32> to vector<2x128xf32>
    %cst_22 = arith.constant dense<0.000000e+00> : vector<2x128xf32>
    %34 = tpu.matmul %28, %8, %cst_22 {dimension_numbers = #tpu.dot_dimension_numbers<[1], [0], [0], [1], [0, 0, 1, 1], [], []>} : vector<2x128xf32>, vector<128x128xf32>, vector<2x128xf32> -> vector<2x128xf32>
    %35 = arith.addf %33, %34 : vector<2x128xf32>
    %36 = arith.negf %35 : vector<2x128xf32>
    %37 = math.exp %36 : vector<2x128xf32>
    %cst_23 = arith.constant 1.000000e+00 : f32
    %38 = vector.broadcast %cst_23 : f32 to vector<2x128xf32>
    %39 = arith.addf %38, %37 : vector<2x128xf32>
    %40 = arith.divf %38, %39 : vector<2x128xf32>
    %41 = math.tanh %35 : vector<2x128xf32>
    %c96_i32_24 = arith.constant 96 : i32
    %42 = tpu.dynamic_rotate %40 by %c96_i32_24 dim 1 : vector<2x128xf32>, i32 -> vector<2x128xf32>
    %c32_i32_25 = arith.constant 32 : i32
    %43 = tpu.dynamic_rotate %40 by %c32_i32_25 dim 1 : vector<2x128xf32>, i32 -> vector<2x128xf32>
    %c64_i32_26 = arith.constant 64 : i32
    %44 = tpu.dynamic_rotate %41 by %c64_i32_26 dim 1 : vector<2x128xf32>, i32 -> vector<2x128xf32>
    %45 = arith.mulf %42, %26 : vector<2x128xf32>
    %46 = arith.mulf %40, %44 : vector<2x128xf32>
    %47 = arith.addf %45, %46 : vector<2x128xf32>
    %48 = math.tanh %47 : vector<2x128xf32>
    %49 = arith.mulf %43, %48 : vector<2x128xf32>
    %c0_27 = arith.constant 0 : index
    %c1_28 = arith.constant 1 : index
    %c0_29 = arith.constant 0 : index
    %50 = vector.load %arg10[%c0_27, %c1_28, %c0_29] : memref<2x8x128xf32, #tpu.memory_space<vmem>>, vector<2x1x128xf32>
    %51 = vector.shape_cast %50 : vector<2x1x128xf32> to vector<2x128xf32>
    %52 = vector.shape_cast %49 : vector<2x128xf32> to vector<2x1x128xf32>
    tpu.vector_store %arg10[%c0_27, %c1_28, %c0_29], %52 {strides = array<i32>} : memref<2x8x128xf32, #tpu.memory_space<vmem>>, vector<2x1x128xf32>,
    %c0_30 = arith.constant 0 : index
    %c2 = arith.constant 2 : index
    %c0_31 = arith.constant 0 : index
    %53 = vector.load %arg9[%c0_30, %c2, %c0_31] : memref<2x8x128xf32, #tpu.memory_space<vmem>>, vector<2x1x128xf32>
    %54 = vector.shape_cast %53 : vector<2x1x128xf32> to vector<2x128xf32>
    %cst_32 = arith.constant dense<0.000000e+00> : vector<2x128xf32>
    %55 = tpu.matmul %49, %8, %cst_32 {dimension_numbers = #tpu.dot_dimension_numbers<[1], [0], [0], [1], [0, 0, 1, 1], [], []>} : vector<2x128xf32>, vector<128x128xf32>, vector<2x128xf32> -> vector<2x128xf32>
    %56 = arith.addf %54, %55 : vector<2x128xf32>
    %57 = arith.negf %56 : vector<2x128xf32>
    %58 = math.exp %57 : vector<2x128xf32>
    %cst_33 = arith.constant 1.000000e+00 : f32
    %59 = vector.broadcast %cst_33 : f32 to vector<2x128xf32>
    %60 = arith.addf %59, %58 : vector<2x128xf32>
    %61 = arith.divf %59, %60 : vector<2x128xf32>
    %62 = math.tanh %56 : vector<2x128xf32>
    %c96_i32_34 = arith.constant 96 : i32
    %63 = tpu.dynamic_rotate %61 by %c96_i32_34 dim 1 : vector<2x128xf32>, i32 -> vector<2x128xf32>
    %c32_i32_35 = arith.constant 32 : i32
    %64 = tpu.dynamic_rotate %61 by %c32_i32_35 dim 1 : vector<2x128xf32>, i32 -> vector<2x128xf32>
    %c64_i32_36 = arith.constant 64 : i32
    %65 = tpu.dynamic_rotate %62 by %c64_i32_36 dim 1 : vector<2x128xf32>, i32 -> vector<2x128xf32>
    %66 = arith.mulf %63, %47 : vector<2x128xf32>
    %67 = arith.mulf %61, %65 : vector<2x128xf32>
    %68 = arith.addf %66, %67 : vector<2x128xf32>
    %69 = math.tanh %68 : vector<2x128xf32>
    %70 = arith.mulf %64, %69 : vector<2x128xf32>
    %c0_37 = arith.constant 0 : index
    %c2_38 = arith.constant 2 : index
    %c0_39 = arith.constant 0 : index
    %71 = vector.load %arg10[%c0_37, %c2_38, %c0_39] : memref<2x8x128xf32, #tpu.memory_space<vmem>>, vector<2x1x128xf32>
    %72 = vector.shape_cast %71 : vector<2x1x128xf32> to vector<2x128xf32>
    %73 = vector.shape_cast %70 : vector<2x128xf32> to vector<2x1x128xf32>
    tpu.vector_store %arg10[%c0_37, %c2_38, %c0_39], %73 {strides = array<i32>} : memref<2x8x128xf32, #tpu.memory_space<vmem>>, vector<2x1x128xf32>,
    %c0_40 = arith.constant 0 : index
    %c3 = arith.constant 3 : index
    %c0_41 = arith.constant 0 : index
    %74 = vector.load %arg9[%c0_40, %c3, %c0_41] : memref<2x8x128xf32, #tpu.memory_space<vmem>>, vector<2x1x128xf32>
    %75 = vector.shape_cast %74 : vector<2x1x128xf32> to vector<2x128xf32>
    %cst_42 = arith.constant dense<0.000000e+00> : vector<2x128xf32>
    %76 = tpu.matmul %70, %8, %cst_42 {dimension_numbers = #tpu.dot_dimension_numbers<[1], [0], [0], [1], [0, 0, 1, 1], [], []>} : vector<2x128xf32>, vector<128x128xf32>, vector<2x128xf32> -> vector<2x128xf32>
    %77 = arith.addf %75, %76 : vector<2x128xf32>
    %78 = arith.negf %77 : vector<2x128xf32>
    %79 = math.exp %78 : vector<2x128xf32>
    %cst_43 = arith.constant 1.000000e+00 : f32
    %80 = vector.broadcast %cst_43 : f32 to vector<2x128xf32>
    %81 = arith.addf %80, %79 : vector<2x128xf32>
    %82 = arith.divf %80, %81 : vector<2x128xf32>
    %83 = math.tanh %77 : vector<2x128xf32>
    %c96_i32_44 = arith.constant 96 : i32
    %84 = tpu.dynamic_rotate %82 by %c96_i32_44 dim 1 : vector<2x128xf32>, i32 -> vector<2x128xf32>
    %c32_i32_45 = arith.constant 32 : i32
    %85 = tpu.dynamic_rotate %82 by %c32_i32_45 dim 1 : vector<2x128xf32>, i32 -> vector<2x128xf32>
    %c64_i32_46 = arith.constant 64 : i32
    %86 = tpu.dynamic_rotate %83 by %c64_i32_46 dim 1 : vector<2x128xf32>, i32 -> vector<2x128xf32>
    %87 = arith.mulf %84, %68 : vector<2x128xf32>
    %88 = arith.mulf %82, %86 : vector<2x128xf32>
    %89 = arith.addf %87, %88 : vector<2x128xf32>
    %90 = math.tanh %89 : vector<2x128xf32>
    %91 = arith.mulf %85, %90 : vector<2x128xf32>
    %c0_47 = arith.constant 0 : index
    %c3_48 = arith.constant 3 : index
    %c0_49 = arith.constant 0 : index
    %92 = vector.load %arg10[%c0_47, %c3_48, %c0_49] : memref<2x8x128xf32, #tpu.memory_space<vmem>>, vector<2x1x128xf32>
    %93 = vector.shape_cast %92 : vector<2x1x128xf32> to vector<2x128xf32>
    %94 = vector.shape_cast %91 : vector<2x128xf32> to vector<2x1x128xf32>
    tpu.vector_store %arg10[%c0_47, %c3_48, %c0_49], %94 {strides = array<i32>} : memref<2x8x128xf32, #tpu.memory_space<vmem>>, vector<2x1x128xf32>,
    %c0_50 = arith.constant 0 : index
    %c4 = arith.constant 4 : index
    %c0_51 = arith.constant 0 : index
    %95 = vector.load %arg9[%c0_50, %c4, %c0_51] : memref<2x8x128xf32, #tpu.memory_space<vmem>>, vector<2x1x128xf32>
    %96 = vector.shape_cast %95 : vector<2x1x128xf32> to vector<2x128xf32>
    %cst_52 = arith.constant dense<0.000000e+00> : vector<2x128xf32>
    %97 = tpu.matmul %91, %8, %cst_52 {dimension_numbers = #tpu.dot_dimension_numbers<[1], [0], [0], [1], [0, 0, 1, 1], [], []>} : vector<2x128xf32>, vector<128x128xf32>, vector<2x128xf32> -> vector<2x128xf32>
    %98 = arith.addf %96, %97 : vector<2x128xf32>
    %99 = arith.negf %98 : vector<2x128xf32>
    %100 = math.exp %99 : vector<2x128xf32>
    %cst_53 = arith.constant 1.000000e+00 : f32
    %101 = vector.broadcast %cst_53 : f32 to vector<2x128xf32>
    %102 = arith.addf %101, %100 : vector<2x128xf32>
    %103 = arith.divf %101, %102 : vector<2x128xf32>
    %104 = math.tanh %98 : vector<2x128xf32>
    %c96_i32_54 = arith.constant 96 : i32
    %105 = tpu.dynamic_rotate %103 by %c96_i32_54 dim 1 : vector<2x128xf32>, i32 -> vector<2x128xf32>
    %c32_i32_55 = arith.constant 32 : i32
    %106 = tpu.dynamic_rotate %103 by %c32_i32_55 dim 1 : vector<2x128xf32>, i32 -> vector<2x128xf32>
    %c64_i32_56 = arith.constant 64 : i32
    %107 = tpu.dynamic_rotate %104 by %c64_i32_56 dim 1 : vector<2x128xf32>, i32 -> vector<2x128xf32>
    %108 = arith.mulf %105, %89 : vector<2x128xf32>
    %109 = arith.mulf %103, %107 : vector<2x128xf32>
    %110 = arith.addf %108, %109 : vector<2x128xf32>
    %111 = math.tanh %110 : vector<2x128xf32>
    %112 = arith.mulf %106, %111 : vector<2x128xf32>
    %c0_57 = arith.constant 0 : index
    %c4_58 = arith.constant 4 : index
    %c0_59 = arith.constant 0 : index
    %113 = vector.load %arg10[%c0_57, %c4_58, %c0_59] : memref<2x8x128xf32, #tpu.memory_space<vmem>>, vector<2x1x128xf32>
    %114 = vector.shape_cast %113 : vector<2x1x128xf32> to vector<2x128xf32>
    %115 = vector.shape_cast %112 : vector<2x128xf32> to vector<2x1x128xf32>
    tpu.vector_store %arg10[%c0_57, %c4_58, %c0_59], %115 {strides = array<i32>} : memref<2x8x128xf32, #tpu.memory_space<vmem>>, vector<2x1x128xf32>,
    %c0_60 = arith.constant 0 : index
    %c5 = arith.constant 5 : index
    %c0_61 = arith.constant 0 : index
    %116 = vector.load %arg9[%c0_60, %c5, %c0_61] : memref<2x8x128xf32, #tpu.memory_space<vmem>>, vector<2x1x128xf32>
    %117 = vector.shape_cast %116 : vector<2x1x128xf32> to vector<2x128xf32>
    %cst_62 = arith.constant dense<0.000000e+00> : vector<2x128xf32>
    %118 = tpu.matmul %112, %8, %cst_62 {dimension_numbers = #tpu.dot_dimension_numbers<[1], [0], [0], [1], [0, 0, 1, 1], [], []>} : vector<2x128xf32>, vector<128x128xf32>, vector<2x128xf32> -> vector<2x128xf32>
    %119 = arith.addf %117, %118 : vector<2x128xf32>
    %120 = arith.negf %119 : vector<2x128xf32>
    %121 = math.exp %120 : vector<2x128xf32>
    %cst_63 = arith.constant 1.000000e+00 : f32
    %122 = vector.broadcast %cst_63 : f32 to vector<2x128xf32>
    %123 = arith.addf %122, %121 : vector<2x128xf32>
    %124 = arith.divf %122, %123 : vector<2x128xf32>
    %125 = math.tanh %119 : vector<2x128xf32>
    %c96_i32_64 = arith.constant 96 : i32
    %126 = tpu.dynamic_rotate %124 by %c96_i32_64 dim 1 : vector<2x128xf32>, i32 -> vector<2x128xf32>
    %c32_i32_65 = arith.constant 32 : i32
    %127 = tpu.dynamic_rotate %124 by %c32_i32_65 dim 1 : vector<2x128xf32>, i32 -> vector<2x128xf32>
    %c64_i32_66 = arith.constant 64 : i32
    %128 = tpu.dynamic_rotate %125 by %c64_i32_66 dim 1 : vector<2x128xf32>, i32 -> vector<2x128xf32>
    %129 = arith.mulf %126, %110 : vector<2x128xf32>
    %130 = arith.mulf %124, %128 : vector<2x128xf32>
    %131 = arith.addf %129, %130 : vector<2x128xf32>
    %132 = math.tanh %131 : vector<2x128xf32>
    %133 = arith.mulf %127, %132 : vector<2x128xf32>
    %c0_67 = arith.constant 0 : index
    %c5_68 = arith.constant 5 : index
    %c0_69 = arith.constant 0 : index
    %134 = vector.load %arg10[%c0_67, %c5_68, %c0_69] : memref<2x8x128xf32, #tpu.memory_space<vmem>>, vector<2x1x128xf32>
    %135 = vector.shape_cast %134 : vector<2x1x128xf32> to vector<2x128xf32>
    %136 = vector.shape_cast %133 : vector<2x128xf32> to vector<2x1x128xf32>
    tpu.vector_store %arg10[%c0_67, %c5_68, %c0_69], %136 {strides = array<i32>} : memref<2x8x128xf32, #tpu.memory_space<vmem>>, vector<2x1x128xf32>,
    %c0_70 = arith.constant 0 : index
    %c6 = arith.constant 6 : index
    %c0_71 = arith.constant 0 : index
    %137 = vector.load %arg9[%c0_70, %c6, %c0_71] : memref<2x8x128xf32, #tpu.memory_space<vmem>>, vector<2x1x128xf32>
    %138 = vector.shape_cast %137 : vector<2x1x128xf32> to vector<2x128xf32>
    %cst_72 = arith.constant dense<0.000000e+00> : vector<2x128xf32>
    %139 = tpu.matmul %133, %8, %cst_72 {dimension_numbers = #tpu.dot_dimension_numbers<[1], [0], [0], [1], [0, 0, 1, 1], [], []>} : vector<2x128xf32>, vector<128x128xf32>, vector<2x128xf32> -> vector<2x128xf32>
    %140 = arith.addf %138, %139 : vector<2x128xf32>
    %141 = arith.negf %140 : vector<2x128xf32>
    %142 = math.exp %141 : vector<2x128xf32>
    %cst_73 = arith.constant 1.000000e+00 : f32
    %143 = vector.broadcast %cst_73 : f32 to vector<2x128xf32>
    %144 = arith.addf %143, %142 : vector<2x128xf32>
    %145 = arith.divf %143, %144 : vector<2x128xf32>
    %146 = math.tanh %140 : vector<2x128xf32>
    %c96_i32_74 = arith.constant 96 : i32
    %147 = tpu.dynamic_rotate %145 by %c96_i32_74 dim 1 : vector<2x128xf32>, i32 -> vector<2x128xf32>
    %c32_i32_75 = arith.constant 32 : i32
    %148 = tpu.dynamic_rotate %145 by %c32_i32_75 dim 1 : vector<2x128xf32>, i32 -> vector<2x128xf32>
    %c64_i32_76 = arith.constant 64 : i32
    %149 = tpu.dynamic_rotate %146 by %c64_i32_76 dim 1 : vector<2x128xf32>, i32 -> vector<2x128xf32>
    %150 = arith.mulf %147, %131 : vector<2x128xf32>
    %151 = arith.mulf %145, %149 : vector<2x128xf32>
    %152 = arith.addf %150, %151 : vector<2x128xf32>
    %153 = math.tanh %152 : vector<2x128xf32>
    %154 = arith.mulf %148, %153 : vector<2x128xf32>
    %c0_77 = arith.constant 0 : index
    %c6_78 = arith.constant 6 : index
    %c0_79 = arith.constant 0 : index
    %155 = vector.load %arg10[%c0_77, %c6_78, %c0_79] : memref<2x8x128xf32, #tpu.memory_space<vmem>>, vector<2x1x128xf32>
    %156 = vector.shape_cast %155 : vector<2x1x128xf32> to vector<2x128xf32>
    %157 = vector.shape_cast %154 : vector<2x128xf32> to vector<2x1x128xf32>
    tpu.vector_store %arg10[%c0_77, %c6_78, %c0_79], %157 {strides = array<i32>} : memref<2x8x128xf32, #tpu.memory_space<vmem>>, vector<2x1x128xf32>,
    %c0_80 = arith.constant 0 : index
    %c7 = arith.constant 7 : index
    %c0_81 = arith.constant 0 : index
    %158 = vector.load %arg9[%c0_80, %c7, %c0_81] : memref<2x8x128xf32, #tpu.memory_space<vmem>>, vector<2x1x128xf32>
    %159 = vector.shape_cast %158 : vector<2x1x128xf32> to vector<2x128xf32>
    %cst_82 = arith.constant dense<0.000000e+00> : vector<2x128xf32>
    %160 = tpu.matmul %154, %8, %cst_82 {dimension_numbers = #tpu.dot_dimension_numbers<[1], [0], [0], [1], [0, 0, 1, 1], [], []>} : vector<2x128xf32>, vector<128x128xf32>, vector<2x128xf32> -> vector<2x128xf32>
    %161 = arith.addf %159, %160 : vector<2x128xf32>
    %162 = arith.negf %161 : vector<2x128xf32>
    %163 = math.exp %162 : vector<2x128xf32>
    %cst_83 = arith.constant 1.000000e+00 : f32
    %164 = vector.broadcast %cst_83 : f32 to vector<2x128xf32>
    %165 = arith.addf %164, %163 : vector<2x128xf32>
    %166 = arith.divf %164, %165 : vector<2x128xf32>
    %167 = math.tanh %161 : vector<2x128xf32>
    %c96_i32_84 = arith.constant 96 : i32
    %168 = tpu.dynamic_rotate %166 by %c96_i32_84 dim 1 : vector<2x128xf32>, i32 -> vector<2x128xf32>
    %c32_i32_85 = arith.constant 32 : i32
    %169 = tpu.dynamic_rotate %166 by %c32_i32_85 dim 1 : vector<2x128xf32>, i32 -> vector<2x128xf32>
    %c64_i32_86 = arith.constant 64 : i32
    %170 = tpu.dynamic_rotate %167 by %c64_i32_86 dim 1 : vector<2x128xf32>, i32 -> vector<2x128xf32>
    %171 = arith.mulf %168, %152 : vector<2x128xf32>
    %172 = arith.mulf %166, %170 : vector<2x128xf32>
    %173 = arith.addf %171, %172 : vector<2x128xf32>
    %174 = math.tanh %173 : vector<2x128xf32>
    %175 = arith.mulf %169, %174 : vector<2x128xf32>
    %c0_87 = arith.constant 0 : index
    %c7_88 = arith.constant 7 : index
    %c0_89 = arith.constant 0 : index
    %176 = vector.load %arg10[%c0_87, %c7_88, %c0_89] : memref<2x8x128xf32, #tpu.memory_space<vmem>>, vector<2x1x128xf32>
    %177 = vector.shape_cast %176 : vector<2x1x128xf32> to vector<2x128xf32>
    %178 = vector.shape_cast %175 : vector<2x128xf32> to vector<2x1x128xf32>
    tpu.vector_store %arg10[%c0_87, %c7_88, %c0_89], %178 {strides = array<i32>} : memref<2x8x128xf32, #tpu.memory_space<vmem>>, vector<2x1x128xf32>,
    %c0_90 = arith.constant 0 : index
    %c0_91 = arith.constant 0 : index
    %c0_92 = arith.constant 0 : index
    %179 = vector.load %arg10[%c0_90, %c0_91, %c0_92] : memref<2x8x128xf32, #tpu.memory_space<vmem>>, vector<2x8x128xf32>
    %180 = vector.shape_cast %179 : vector<2x8x128xf32> to vector<16x128xf32>
    %cst_93 = arith.constant 0.000000e+00 : f32
    %181 = vector.broadcast %cst_93 : f32 to vector<16x128xf32>
    %182 = arith.maximumf %180, %181 : vector<16x128xf32>
    %c0_94 = arith.constant 0 : index
    %c0_95 = arith.constant 0 : index
    %183 = vector.load %arg4[%c0_94, %c0_95] : memref<128x32xf32, #tpu.memory_space<vmem>>, vector<128x32xf32>
    %cst_96 = arith.constant dense<0.000000e+00> : vector<16x32xf32>
    %184 = tpu.matmul %182, %183, %cst_96 {dimension_numbers = #tpu.dot_dimension_numbers<[1], [0], [0], [1], [0, 0, 1, 1], [], []>} : vector<16x128xf32>, vector<128x32xf32>, vector<16x32xf32> -> vector<16x32xf32>
    %c0_97 = arith.constant 0 : index
    %c0_98 = arith.constant 0 : index
    %185 = vector.load %arg5[%c0_97, %c0_98] : memref<1x32xf32, #tpu.memory_space<vmem>>, vector<1x32xf32>
    %186 = vector.broadcast %185 : vector<1x32xf32> to vector<16x32xf32>
    %187 = arith.addf %184, %186 : vector<16x32xf32>
    %cst_99 = arith.constant 0.000000e+00 : f32
    %188 = vector.broadcast %cst_99 : f32 to vector<16x32xf32>
    %189 = arith.maximumf %187, %188 : vector<16x32xf32>
    %c0_100 = arith.constant 0 : index
    %c0_101 = arith.constant 0 : index
    %190 = vector.load %arg6[%c0_100, %c0_101] : memref<32x128xf32, #tpu.memory_space<vmem>>, vector<32x128xf32>
    %cst_102 = arith.constant dense<0.000000e+00> : vector<16x128xf32>
    %191 = tpu.matmul %189, %190, %cst_102 {dimension_numbers = #tpu.dot_dimension_numbers<[1], [0], [0], [1], [0, 0, 1, 1], [], []>} : vector<16x32xf32>, vector<32x128xf32>, vector<16x128xf32> -> vector<16x128xf32>
    %c0_103 = arith.constant 0 : index
    %c0_104 = arith.constant 0 : index
    %192 = vector.load %arg7[%c0_103, %c0_104] : memref<1x128xf32, #tpu.memory_space<vmem>>, vector<1x128xf32>
    %193 = vector.broadcast %192 : vector<1x128xf32> to vector<16x128xf32>
    %194 = arith.addf %191, %193 : vector<16x128xf32>
    %195 = vector.shape_cast %194 : vector<16x128xf32> to vector<2x8x128xf32>
    %cst_105 = arith.constant dense<0xFF800000> : vector<2x128xf32>
    %196 = vector.multi_reduction <maximumf>, %195, %cst_105 [1] : vector<2x8x128xf32> to vector<2x128xf32>
    %197 = vector.shape_cast %196 : vector<2x128xf32> to vector<2x1x128xf32>
    %198 = vector.broadcast %197 : vector<2x1x128xf32> to vector<2x8x128xf32>
    %199 = arith.subf %195, %198 : vector<2x8x128xf32>
    %200 = math.exp %199 : vector<2x8x128xf32>
    %cst_106 = arith.constant dense<0.000000e+00> : vector<2x128xf32>
    %201 = vector.multi_reduction <add>, %200, %cst_106 [1] : vector<2x8x128xf32> to vector<2x128xf32>
    %202 = vector.shape_cast %201 : vector<2x128xf32> to vector<2x1x128xf32>
    %203 = math.log %202 : vector<2x1x128xf32>
    %204 = vector.broadcast %203 : vector<2x1x128xf32> to vector<2x8x128xf32>
    %205 = arith.subf %199, %204 : vector<2x8x128xf32>
    %c0_107 = arith.constant 0 : index
    %c0_108 = arith.constant 0 : index
    %c0_109 = arith.constant 0 : index
    %206 = vector.load %arg8[%c0_107, %c0_108, %c0_109] : memref<2x8x128xf32, #tpu.memory_space<vmem>>, vector<2x8x128xf32>
    tpu.vector_store %arg8[%c0_107, %c0_108, %c0_109], %205 {strides = array<i32>} : memref<2x8x128xf32, #tpu.memory_space<vmem>>, vector<2x8x128xf32>,
    return
  }
}

</mosaic_0001>

<bundles_post_ra>
// kernel: _forward_core.1
= control target key start
LH: loop header
LB: loop body
LE: loop exit
PB: predicated region body
PF: predicated region fallthrough
CT: control target
= control target key end

     0   :  { %vm38_vm0 = vcmask 130048   ;;  %s1660_s0 = inlined_call_operand.vmem [shape: f32[16,16], index: 0, kind: input, shape index: {}]   ;;  %s1661_s1 = inlined_call_operand.vmem [shape: f32[16,128], index: 1, kind: input, shape index: {}]   ;;  %s1662_s2 = inlined_call_operand.vmem [shape: f32[128,128], index: 2, kind: input, shape index: {}]   ;;  %s1663_s3 = inlined_call_operand.vmem [shape: f32[1,128], index: 3, kind: input, shape index: {}]   ;;  %s1664_s4 = inlined_call_operand.vmem [shape: f32[128,32], index: 4, kind: input, shape index: {}]   ;;  %s1665_s5 = inlined_call_operand.vmem [shape: f32[1,32], index: 5, kind: input, shape index: {}]   ;;  %s1666_s6 = inlined_call_operand.vmem [shape: f32[32,128], index: 6, kind: input, shape index: {}]   ;;  %s1667_s7 = inlined_call_operand.vmem [shape: f32[1,128], index: 7, kind: input, shape index: {}]   ;;  %s1668_s8 = inlined_call_operand.hbm [shape: f32[2,8,128], index: 8, kind: output, shape index: {}]  }
   0x1   :  { %v1293_v0 = vld [vmem:[%s1662_s2 + $0x78] sm:$0xff]  ;;  %v1298_v1 = vld [vmem:[%s1662_s2 + $0x70] sm:$0xff]  ;;  %v1305_v2 = vld [vmem:[%s1662_s2 + $0x68] sm:$0xff] }
   0x2   :  { %88 = vmatpush.msra.mxu3 %v1293_v0  ;;  %193 = vmatpush.msra.mxu2 %v1293_v0  ;;  %v33_v3 = vld [vmem:[%s1661_s1 + $0x8] sm:$0xff]  ;;  %v32_v4 = vld [vmem:[%s1661_s1] sm:$0xff]  ;;  %v1330_v7 = vld [vmem:[%s1662_s2 + $0x58] sm:$0xff] }
   0x3   :  { %505 = vmatpush.msra.mxu1 %v1293_v0  ;;  %v1319_v5 = vld [vmem:[%s1662_s2 + $0x60] sm:$0xff]  ;;  %59 = vmatpush.msra.mxu0 %v33_v3  ;;  %v1338_v8 = vld [vmem:[%s1662_s2 + $0x50] sm:$0xff] }
   0x4   :  { %89 = vmatpush.msra.mxu3 %v1298_v1  ;;  %194 = vmatpush.msra.mxu2 %v1298_v1  ;;  %v30_v6 = vld [vmem:[%s1660_s0] sm:$0xff] }
   0x5   :  { %506 = vmatpush.msra.mxu1 %v1298_v1  ;;  %60 = vmatpush.msra.mxu0 %v32_v4 }
   0x6   :  { %90 = vmatpush.msra.mxu3 %v1305_v2  ;;  %195 = vmatpush.msra.mxu2 %v1305_v2 }
   0x7   :  { %507 = vmatpush.msra.mxu1 %v1305_v2  ;;  %1062 = vmatmul.msk.f32.vlgmr.msra.gmra.mxu0 %vm38_vm0, %v30_v6 }
   0x8   :  { %91 = vmatpush.msra.mxu3 %v1319_v5  ;;  %196 = vmatpush.msra.mxu2 %v1319_v5 }
   0x9   :  { %401 = vmatpush.msrb.mxu0 %v1293_v0 }
   0xa   :  { %13 = vsyncpa [#allocation5], 0  ;;  %92 = vmatpush.msra.mxu3 %v1330_v7  ;;  %508 = vmatpush.msra.mxu1 %v1319_v5  ;;  %v1347_v9 = vld [vmem:[%s1662_s2 + $0x48] sm:$0xff]  ;;  %v1356_v10 = vld [vmem:[%s1662_s2 + $0x40] sm:$0xff]  ;;  %v1238_v20 = vmov 0.0   ;;  %vm157_vm1 = vcmask 1041409  }
   0xb   :  { %197 = vmatpush.msra.mxu2 %v1330_v7  ;;  %402 = vmatpush.msrb.mxu0 %v1298_v1  ;;  %v31_v11 = vld [vmem:[%s1660_s0 + $0x8] sm:$0xff]  ;;  %v1368_v12 = vld [vmem:[%s1662_s2 + $0x38] sm:$0xff]  ;;  %v1377_v13 = vld [vmem:[%s1662_s2 + $0x30] sm:$0xff]  ;;  %s1240_s21 = smov 32   ;;  %s1241_s22 = smov 96  }
   0xc   :  { %93 = vmatpush.msra.mxu3 %v1338_v8  ;;  %509 = vmatpush.msra.mxu1 %v1330_v7  ;;  %v1386_v14 = vld [vmem:[%s1662_s2 + $0x28] sm:$0xff]  ;;  %v1395_v15 = vld [vmem:[%s1662_s2 + $0x20] sm:$0xff]  ;;  %v1404_v16 = vld [vmem:[%s1662_s2 + $0x18] sm:$0xff]  ;;  %s1050_s18 = sshll.u32 %s1668_s8, 4  ;;  %s1243_s1 = smov 128   ;;  %s1051_s18 = int_to_ptr.hbm [resolvable:$true] %s1050_s18 }
   0xd   :  { %198 = vmatpush.msra.mxu2 %v1338_v8  ;;  %403 = vmatpush.msrb.mxu0 %v1305_v2  ;;  %v1413_v17 = vld [vmem:[%s1662_s2 + $0x10] sm:$0xff]  ;;  %v1422_v18 = vld [vmem:[%s1662_s2 + $0x8] sm:$0xff]  ;;  %v1431_v19 = vld [vmem:[%s1662_s2] sm:$0xff]  ;;  %s1244_s19 = smov 8  }
   0xe   :  { %94 = vmatpush.msra.mxu3 %v1347_v9  ;;  %510 = vmatpush.msra.mxu1 %v1338_v8  ;;  %v1089_v21 = vld [vmem:[%s1663_s3] ss:$0 sm:$0xff]  ;;  %s1239_s3 = smov 64  }
   0xf   :  { %199 = vmatpush.msra.mxu2 %v1347_v9  ;;  %404 = vmatpush.msrb.mxu0 %v1319_v5 }
  0x10   :  { %95 = vmatpush.msra.mxu3 %v1356_v10  ;;  %1063 = vmatmul.msk.f32.gmra.mxu0 %vm38_vm0, %v31_v11 }
  0x11   :  { %200 = vmatpush.msra.mxu2 %v1356_v10  ;;  %405 = vmatpush.msrb.mxu0 %v1330_v7 }
  0x12   :  { %96 = vmatpush.msra.mxu3 %v1368_v12  ;;  %511 = vmatpush.msra.mxu1 %v1347_v9 }
  0x13   :  { %201 = vmatpush.msra.mxu2 %v1368_v12  ;;  %406 = vmatpush.msrb.mxu0 %v1338_v8 }
  0x14   :  { %97 = vmatpush.msra.mxu3 %v1377_v13  ;;  %512 = vmatpush.msra.mxu1 %v1356_v10 }
  0x15   :  { %202 = vmatpush.msra.mxu2 %v1377_v13  ;;  %407 = vmatpush.msrb.mxu0 %v1347_v9 }
  0x16   :  { %98 = vmatpush.msra.mxu3 %v1386_v14  ;;  %513 = vmatpush.msra.mxu1 %v1368_v12 }
  0x17   :  { %203 = vmatpush.msra.mxu2 %v1386_v14  ;;  %408 = vmatpush.msrb.mxu0 %v1356_v10 }
  0x18   :  { %99 = vmatpush.msra.mxu3 %v1395_v15  ;;  %514 = vmatpush.msra.mxu1 %v1377_v13 }
  0x19   :  { %204 = vmatpush.msra.mxu2 %v1395_v15  ;;  %409 = vmatpush.msrb.mxu0 %v1368_v12 }
  0x1a   :  { %100 = vmatpush.msra.mxu3 %v1404_v16  ;;  %515 = vmatpush.msra.mxu1 %v1386_v14 }
  0x1b   :  { %205 = vmatpush.msra.mxu2 %v1404_v16  ;;  %410 = vmatpush.msrb.mxu0 %v1377_v13 }
  0x1c   :  { %101 = vmatpush.msra.mxu3 %v1413_v17  ;;  %516 = vmatpush.msra.mxu1 %v1395_v15 }
  0x1d   :  { %206 = vmatpush.msra.mxu2 %v1413_v17  ;;  %411 = vmatpush.msrb.mxu0 %v1386_v14 }
  0x1e   :  { %102 = vmatpush.msra.mxu3 %v1422_v18  ;;  %517 = vmatpush.msra.mxu1 %v1404_v16 }
  0x1f   :  { %207 = vmatpush.msra.mxu2 %v1422_v18  ;;  %412 = vmatpush.msrb.mxu0 %v1395_v15 }
  0x20   :  { %103 = vmatpush.msra.mxu3 %v1431_v19  ;;  %518 = vmatpush.msra.mxu1 %v1413_v17 }
  0x21   :  { %104 = vmatmul.f32.vlgmr.msra.gmra.mxu3 %v1238_v20  ;;  %208 = vmatpush.msra.mxu2 %v1431_v19 }
  0x22   :  { %297 = vmatpush.msrb.mxu3 %v1293_v0  ;;  %413 = vmatpush.msrb.mxu0 %v1404_v16 }
  0x23   :  { %519 = vmatpush.msra.mxu1 %v1422_v18  ;;  %609 = vmatpush.msrb.mxu2 %v1293_v0 }
  0x24   :  { %298 = vmatpush.msrb.mxu3 %v1298_v1  ;;  %414 = vmatpush.msrb.mxu0 %v1413_v17 }
  0x25   :  { %520 = vmatpush.msra.mxu1 %v1431_v19  ;;  %610 = vmatpush.msrb.mxu2 %v1298_v1 }
  0x26   :  { %299 = vmatpush.msrb.mxu3 %v1305_v2  ;;  %415 = vmatpush.msrb.mxu0 %v1422_v18 }
  0x27   :  { %611 = vmatpush.msrb.mxu2 %v1305_v2 }
  0x28   :  { %300 = vmatpush.msrb.mxu3 %v1319_v5  ;;  %416 = vmatpush.msrb.mxu0 %v1431_v19 }
  0x29   :  { %612 = vmatpush.msrb.mxu2 %v1319_v5 }
  0x2a   :  { %817 = vmatpush.msra.mxu0 %v1293_v0  ;;  %301 = vmatpush.msrb.mxu3 %v1330_v7 }
  0x2b   :  { %613 = vmatpush.msrb.mxu2 %v1330_v7 }
  0x2c   :  { %818 = vmatpush.msra.mxu0 %v1298_v1  ;;  %302 = vmatpush.msrb.mxu3 %v1338_v8 }
  0x2d   :  { %614 = vmatpush.msrb.mxu2 %v1338_v8 }
  0x2e   :  { %819 = vmatpush.msra.mxu0 %v1305_v2  ;;  %303 = vmatpush.msrb.mxu3 %v1347_v9 }
  0x2f   :  { %615 = vmatpush.msrb.mxu2 %v1347_v9 }
  0x30   :  { %820 = vmatpush.msra.mxu0 %v1319_v5  ;;  %304 = vmatpush.msrb.mxu3 %v1356_v10 }
  0x31   :  { %616 = vmatpush.msrb.mxu2 %v1356_v10 }
  0x32   :  { %821 = vmatpush.msra.mxu0 %v1330_v7  ;;  %305 = vmatpush.msrb.mxu3 %v1368_v12 }
  0x33   :  { %617 = vmatpush.msrb.mxu2 %v1368_v12 }
  0x34   :  { %822 = vmatpush.msra.mxu0 %v1338_v8  ;;  %306 = vmatpush.msrb.mxu3 %v1377_v13 }
  0x35   :  { %618 = vmatpush.msrb.mxu2 %v1377_v13 }
  0x36   :  { %823 = vmatpush.msra.mxu0 %v1347_v9  ;;  %307 = vmatpush.msrb.mxu3 %v1386_v14 }
  0x37   :  { %619 = vmatpush.msrb.mxu2 %v1386_v14 }
  0x38   :  { %824 = vmatpush.msra.mxu0 %v1356_v10  ;;  %308 = vmatpush.msrb.mxu3 %v1395_v15 }
  0x39   :  { %620 = vmatpush.msrb.mxu2 %v1395_v15 }
  0x3a   :  { %825 = vmatpush.msra.mxu0 %v1368_v12  ;;  %309 = vmatpush.msrb.mxu3 %v1404_v16 }
  0x3b   :  { %621 = vmatpush.msrb.mxu2 %v1404_v16 }
  0x3c   :  { %826 = vmatpush.msra.mxu0 %v1377_v13  ;;  %310 = vmatpush.msrb.mxu3 %v1413_v17 }
  0x3d   :  { %622 = vmatpush.msrb.mxu2 %v1413_v17 }
  0x3e   :  { %827 = vmatpush.msra.mxu0 %v1386_v14  ;;  %311 = vmatpush.msrb.mxu3 %v1422_v18 }
  0x3f   :  { %623 = vmatpush.msrb.mxu2 %v1422_v18 }
  0x40   :  { %828 = vmatpush.msra.mxu0 %v1395_v15  ;;  %312 = vmatpush.msrb.mxu3 %v1431_v19 }
  0x41   :  { %624 = vmatpush.msrb.mxu2 %v1431_v19 }
  0x42   :  { %713 = vmatpush.msra.mxu3 %v1293_v0  ;;  %829 = vmatpush.msra.mxu0 %v1404_v16 }
  0x44   :  { %714 = vmatpush.msra.mxu3 %v1298_v1  ;;  %830 = vmatpush.msra.mxu0 %v1413_v17 }
  0x46   :  { %715 = vmatpush.msra.mxu3 %v1305_v2  ;;  %831 = vmatpush.msra.mxu0 %v1422_v18 }
  0x48   :  { %716 = vmatpush.msra.mxu3 %v1319_v5  ;;  %832 = vmatpush.msra.mxu0 %v1431_v19 }
  0x4a   :  { %717 = vmatpush.msra.mxu3 %v1330_v7 }
  0x4c   :  { %718 = vmatpush.msra.mxu3 %v1338_v8 }
  0x4e   :  { %719 = vmatpush.msra.mxu3 %v1347_v9 }
  0x50   :  { %720 = vmatpush.msra.mxu3 %v1356_v10 }
  0x52   :  { %721 = vmatpush.msra.mxu3 %v1368_v12 }
  0x54   :  { %722 = vmatpush.msra.mxu3 %v1377_v13 }
  0x56   :  { %723 = vmatpush.msra.mxu3 %v1386_v14 }
  0x58   :  { %724 = vmatpush.msra.mxu3 %v1395_v15 }
  0x5a   :  { %725 = vmatpush.msra.mxu3 %v1404_v16 }
  0x5c   :  { %726 = vmatpush.msra.mxu3 %v1413_v17 }
  0x5e   :  { %727 = vmatpush.msra.mxu3 %v1422_v18 }
  0x60   :  { %728 = vmatpush.msra.mxu3 %v1431_v19 }
  0x84   :  { %v62_v22 = vpop.f32.mrf.mxu0 }
  0x85   :  { %v63_v23 = vadd.f32 %v1089_v21, %v62_v22 }
  0x87   :  { %68 = vst [vmem:[#allocation2] sm:$0xff] %v63_v23 }
  0x8d   :  { %v65_v24 = vpop.f32.mrf.mxu0 }
  0x8e   :  { %v66_v25 = vadd.f32 %v1089_v21, %v65_v24  ;;  %v86_v26 = vld [vmem:[#allocation2] sm:$0x1]  ;;  %v191_v13 = vld [vmem:[#allocation2 + $0x1] sm:$0x1] }
  0x90   :  { %69 = vst [vmem:[#allocation2 + $0x8] sm:$0xff] %v66_v25 }
  0x97   :  { %v87_v27 = vld [vmem:[#allocation2 + $0x8] sm:$0x1]  ;;  %v192_v17 = vld [vmem:[#allocation2 + $0x9] sm:$0x1] }
  0xa4   :  { %v105_v28 = vpop.f32.mrf.mxu3 }
  0xa5   :  { %v109_v29 = vrot.slane %v105_v28, 1  ;;  %v112_v30 = vadd.f32 %v105_v28, %v86_v26 }
  0xa7   :  { %v113_v31 = vadd.f32 %v109_v29, %v87_v27  ;;  %v1064_v32 = vmul.f32 -1.442695, %v112_v30 }
  0xa9   :  { %1092 = vpow2.f32 %v1064_v32  ;;  %v1065_v33 = vmul.f32 -1.442695, %v113_v31 }
  0xaa   :  { %1094 = vtanh.f32 %v113_v31 }
  0xab   :  { %1096 = vpow2.f32 %v1065_v33 }
  0xac   :  { %1098 = vtanh.f32 %v112_v30 }
  0xaf   :  { %v1093_v34 = vpop.eup %1092 }
  0xb0   :  { %v1095_v35 = vpop.eup %1094  ;;  %v120_v36 = vadd.f32 1.0, %v1093_v34 }
  0xb1   :  { %v1097_v37 = vpop.eup %1096  ;;  %v166_v38 = vrot.slane %v1095_v35, 7 }
  0xb2   :  { %v1099_v39 = vpop.eup %1098  ;;  %v121_v40 = vadd.f32 1.0, %v1097_v37  ;;  %1100 = vrcp.f32 %v120_v36  ;;  %vm127_vm4 = vweird.f32 %v120_v36  ;;  %v133_v53 = vand.u32 2147483648, %v120_v36 }
  0xb3   :  { %v167_v41 = vsel %vm157_vm1, %v166_v38, %v1099_v39  ;;  %v131_v54 = vand.u32 2147483647, %v120_v36 }
  0xb4   :  { %1102 = vrcp.f32 %v121_v40  ;;  %169 = vrot.lane.b32.xlu0 %v167_v41, %s1239_s3  ;;  %v148_v49 = vand.u32 2147483648, %v121_v40  ;;  %v146_v52 = vand.u32 2147483647, %v121_v40  ;;  %vm142_vm6 = vweird.f32 %v121_v40 }
  0xb5   :  { %v134_v59 = vor.u32 1.1754944e-38, %v133_v53  ;;  %vm132_vm9 = vcmp.eq.f32.partialorder %v131_v54, 8.507059e+37 }
  0xb6   :  { %v149_v56 = vor.u32 1.1754944e-38, %v148_v49  ;;  %vm147_vm8 = vcmp.eq.f32.partialorder %v146_v52, 8.507059e+37 }
  0xb8   :  { %v1101_v42 = vpop.eup %1100 }
  0xb9   :  { %v123_v43 = vmul.f32 %v1101_v42, %v120_v36  ;;  %vm128_vm2 = vweird.f32 %v1101_v42 }
  0xba   :  { %v1103_v44 = vpop.eup %1102  ;;  %vm129_vm5 = vmor %vm127_vm4, %vm128_vm2 }
  0xbb   :  { %v124_v45 = vsub.f32 1.0, %v123_v43  ;;  %v138_v46 = vmul.f32 %v1103_v44, %v121_v40  ;;  %vm143_vm3 = vweird.f32 %v1103_v44 }
  0xbc   :  { %vm144_vm7 = vmor %vm142_vm6, %vm143_vm3 }
  0xbd   :  { %v125_v47 = vmul.f32 %v1101_v42, %v124_v45  ;;  %v139_v48 = vsub.f32 1.0, %v138_v46 }
  0xbf   :  { %v126_v50 = vadd.f32 %v1101_v42, %v125_v47  ;;  %v140_v51 = vmul.f32 %v1103_v44, %v139_v48 }
  0xc1   :  { %v141_v55 = vadd.f32 %v1103_v44, %v140_v51  ;;  %v130_v57 = vsel %vm129_vm5, %v1101_v42, %v126_v50 }
  0xc2   :  { %v135_v62 = vsel %vm132_vm9, %v134_v59, %v130_v57 }
  0xc3   :  { %v145_v58 = vsel %vm144_vm7, %v1103_v44, %v141_v55 }
  0xc4   :  { %v150_v60 = vsel %vm147_vm8, %v149_v56, %v145_v58 }
  0xc5   :  { %v156_v61 = vrot.slane %v150_v60, 7 }
  0xc7   :  { %v158_v63 = vsel %vm157_vm1, %v156_v61, %v135_v62 }
  0xc8   :  { %162 = vrot.lane.b32.xlu1 %v158_v63, %s1240_s21  ;;  %160 = vrot.lane.b32.xlu0 %v158_v63, %s1241_s22 }
 0x126   :  { %v170_v0 = vpop.permute.xlu0 %169 }
 0x127   :  { %v173_v1 = vrot.slane %v170_v0, 1  ;;  %v176_v4 = vmul.f32 %v170_v0, %v135_v62  ;;  %v295_v0 = vld [vmem:[#allocation2 + $0x2] sm:$0x1] }
 0x129   :  { %v177_v2 = vmul.f32 %v173_v1, %v150_v60 }
 0x12b   :  { %v180_v3 = vrot.slane %v177_v2, 7 }
 0x12d   :  { %v181_v7 = vsel %vm157_vm1, %v180_v3, %v176_v4  ;;  %v296_v4 = vld [vmem:[#allocation2 + $0xa] sm:$0x1] }
 0x13a   :  { %v161_v5 = vpop.permute.xlu0 %160  ;;  %v163_v10 = vpop.permute.xlu1 %162 }
 0x13b   :  { %v171_v6 = vmul.f32 0.0, %v161_v5 }
 0x13d   :  { %v1521_v8 = vadd.f32 %v181_v7, %v171_v6 }
 0x13f   :  { %1104 = vtanh.f32 %v1521_v8 }
 0x145   :  { %v1105_v9 = vpop.eup %1104 }
 0x146   :  { %v185_v11 = vmul.f32 %v1105_v9, %v163_v10 }
 0x148   :  { %v187_v12 = vrot.slane %v185_v11, 1  ;;  %189 = vst [vmem:[#allocation3] sm:$0x1] %v185_v11  ;;  %209 = vmatmul.f32.vlgmr.msra.gmra.mxu2 %v185_v11 }
 0x14a   :  { %190 = vst [vmem:[#allocation3 + $0x8] sm:$0x1] %v187_v12 }
 0x1cb   :  { %v210_v14 = vpop.f32.mrf.mxu2 }
 0x1cc   :  { %v214_v15 = vrot.slane %v210_v14, 1  ;;  %v217_v16 = vadd.f32 %v210_v14, %v191_v13 }
 0x1ce   :  { %v218_v18 = vadd.f32 %v214_v15, %v192_v17  ;;  %v1066_v19 = vmul.f32 -1.442695, %v217_v16 }
 0x1d0   :  { %1106 = vpow2.f32 %v1066_v19  ;;  %v1067_v20 = vmul.f32 -1.442695, %v218_v18 }
 0x1d1   :  { %1108 = vtanh.f32 %v218_v18 }
 0x1d2   :  { %1110 = vpow2.f32 %v1067_v20 }
 0x1d3   :  { %1112 = vtanh.f32 %v217_v16 }
 0x1d6   :  { %v1107_v21 = vpop.eup %1106 }
 0x1d7   :  { %v1109_v22 = vpop.eup %1108  ;;  %v225_v23 = vadd.f32 1.0, %v1107_v21 }
 0x1d8   :  { %v1111_v24 = vpop.eup %1110  ;;  %v270_v25 = vrot.slane %v1109_v22, 7 }
 0x1d9   :  { %v1113_v26 = vpop.eup %1112  ;;  %v226_v27 = vadd.f32 1.0, %v1111_v24  ;;  %1114 = vrcp.f32 %v225_v23  ;;  %vm232_vm12 = vweird.f32 %v225_v23  ;;  %v238_v40 = vand.u32 2147483648, %v225_v23 }
 0x1da   :  { %v271_v28 = vsel %vm157_vm1, %v270_v25, %v1113_v26  ;;  %v236_v41 = vand.u32 2147483647, %v225_v23 }
 0x1db   :  { %1116 = vrcp.f32 %v226_v27  ;;  %273 = vrot.lane.b32.xlu1 %v271_v28, %s1239_s3  ;;  %v253_v36 = vand.u32 2147483648, %v226_v27  ;;  %v251_v39 = vand.u32 2147483647, %v226_v27  ;;  %vm247_vm14 = vweird.f32 %v226_v27 }
 0x1dc   :  { %v239_v46 = vor.u32 1.1754944e-38, %v238_v40  ;;  %vm237_vm2 = vcmp.eq.f32.partialorder %v236_v41, 8.507059e+37 }
 0x1dd   :  { %v254_v43 = vor.u32 1.1754944e-38, %v253_v36  ;;  %vm252_vm0 = vcmp.eq.f32.partialorder %v251_v39, 8.507059e+37 }
 0x1df   :  { %v1115_v29 = vpop.eup %1114 }
 0x1e0   :  { %v228_v30 = vmul.f32 %v1115_v29, %v225_v23  ;;  %vm233_vm10 = vweird.f32 %v1115_v29 }
 0x1e1   :  { %v1117_v31 = vpop.eup %1116  ;;  %vm234_vm13 = vmor %vm232_vm12, %vm233_vm10 }
 0x1e2   :  { %v229_v32 = vsub.f32 1.0, %v228_v30  ;;  %v243_v33 = vmul.f32 %v1117_v31, %v226_v27  ;;  %vm248_vm11 = vweird.f32 %v1117_v31 }
 0x1e3   :  { %vm249_vm15 = vmor %vm247_vm14, %vm248_vm11 }
 0x1e4   :  { %v230_v34 = vmul.f32 %v1115_v29, %v229_v32  ;;  %v244_v35 = vsub.f32 1.0, %v243_v33 }
 0x1e6   :  { %v231_v37 = vadd.f32 %v1115_v29, %v230_v34  ;;  %v245_v38 = vmul.f32 %v1117_v31, %v244_v35 }
 0x1e8   :  { %v246_v42 = vadd.f32 %v1117_v31, %v245_v38  ;;  %v235_v44 = vsel %vm234_vm13, %v1115_v29, %v231_v37 }
 0x1e9   :  { %v240_v49 = vsel %vm237_vm2, %v239_v46, %v235_v44 }
 0x1ea   :  { %v250_v45 = vsel %vm249_vm15, %v1117_v31, %v246_v42 }
 0x1eb   :  { %v255_v47 = vsel %vm252_vm0, %v254_v43, %v250_v45 }
 0x1ec   :  { %v261_v48 = vrot.slane %v255_v47, 7 }
 0x1ee   :  { %v262_v50 = vsel %vm157_vm1, %v261_v48, %v240_v49 }
 0x1ef   :  { %264 = vrot.lane.b32.xlu2 %v262_v50, %s1241_s22 }
 0x1f7   :  { %266 = vrot.lane.b32.xlu2 %v262_v50, %s1240_s21 }
 0x249   :  { %v265_v53 = vpop.permute.xlu2 %264 }
 0x24a   :  { %v275_v57 = vmul.f32 %v265_v53, %v1521_v8 }
 0x24d   :  { %v274_v51 = vpop.permute.xlu1 %273 }
 0x24e   :  { %v277_v52 = vrot.slane %v274_v51, 1  ;;  %v280_v55 = vmul.f32 %v274_v51, %v240_v49  ;;  %v399_v51 = vld [vmem:[#allocation2 + $0x3] sm:$0x1] }
 0x250   :  { %v281_v54 = vmul.f32 %v277_v52, %v255_v47 }
 0x251   :  { %v267_v61 = vpop.permute.xlu2 %266 }
 0x252   :  { %v284_v56 = vrot.slane %v281_v54, 7 }
 0x254   :  { %v285_v58 = vsel %vm157_vm1, %v284_v56, %v280_v55  ;;  %v400_v55 = vld [vmem:[#allocation2 + $0xb] sm:$0x1] }
 0x255   :  { %v1531_v59 = vadd.f32 %v285_v58, %v275_v57 }
 0x257   :  { %1118 = vtanh.f32 %v1531_v59 }
 0x25d   :  { %v1119_v60 = vpop.eup %1118 }
 0x25e   :  { %v289_v62 = vmul.f32 %v1119_v60, %v267_v61 }
 0x260   :  { %v291_v63 = vrot.slane %v289_v62, 1  ;;  %293 = vst [vmem:[#allocation3 + $0x1] sm:$0x1] %v289_v62  ;;  %313 = vmatmul.f32.vlgmr.msrb.gmra.mxu3 %v289_v62 }
 0x262   :  { %294 = vst [vmem:[#allocation3 + $0x9] sm:$0x1] %v291_v63 }
 0x2e3   :  { %v314_v1 = vpop.f32.mrf.mxu3 }
 0x2e4   :  { %v318_v2 = vrot.slane %v314_v1, 1  ;;  %v321_v3 = vadd.f32 %v314_v1, %v295_v0 }
 0x2e6   :  { %v322_v5 = vadd.f32 %v318_v2, %v296_v4  ;;  %v1068_v6 = vmul.f32 -1.442695, %v321_v3 }
 0x2e8   :  { %1120 = vpow2.f32 %v1068_v6  ;;  %v1069_v7 = vmul.f32 -1.442695, %v322_v5 }
 0x2e9   :  { %1122 = vtanh.f32 %v322_v5 }
 0x2ea   :  { %1124 = vpow2.f32 %v1069_v7 }
 0x2eb   :  { %1126 = vtanh.f32 %v321_v3 }
 0x2ee   :  { %v1121_v8 = vpop.eup %1120 }
 0x2ef   :  { %v1123_v9 = vpop.eup %1122  ;;  %v329_v10 = vadd.f32 1.0, %v1121_v8 }
 0x2f0   :  { %v1125_v11 = vpop.eup %1124  ;;  %v374_v12 = vrot.slane %v1123_v9, 7 }
 0x2f1   :  { %v1127_v13 = vpop.eup %1126  ;;  %v330_v14 = vadd.f32 1.0, %v1125_v11  ;;  %1128 = vrcp.f32 %v329_v10  ;;  %vm336_vm5 = vweird.f32 %v329_v10  ;;  %v342_v27 = vand.u32 2147483648, %v329_v10 }
 0x2f2   :  { %v375_v15 = vsel %vm157_vm1, %v374_v12, %v1127_v13  ;;  %v340_v28 = vand.u32 2147483647, %v329_v10 }
 0x2f3   :  { %1130 = vrcp.f32 %v330_v14  ;;  %377 = vrot.lane.b32.xlu0 %v375_v15, %s1239_s3  ;;  %v357_v23 = vand.u32 2147483648, %v330_v14  ;;  %v355_v26 = vand.u32 2147483647, %v330_v14  ;;  %vm351_vm7 = vweird.f32 %v330_v14 }
 0x2f4   :  { %v343_v33 = vor.u32 1.1754944e-38, %v342_v27  ;;  %vm341_vm10 = vcmp.eq.f32.partialorder %v340_v28, 8.507059e+37 }
 0x2f5   :  { %v358_v30 = vor.u32 1.1754944e-38, %v357_v23  ;;  %vm356_vm9 = vcmp.eq.f32.partialorder %v355_v26, 8.507059e+37 }
 0x2f7   :  { %v1129_v16 = vpop.eup %1128 }
 0x2f8   :  { %v332_v17 = vmul.f32 %v1129_v16, %v329_v10  ;;  %vm337_vm3 = vweird.f32 %v1129_v16 }
 0x2f9   :  { %v1131_v18 = vpop.eup %1130  ;;  %vm338_vm6 = vmor %vm336_vm5, %vm337_vm3 }
 0x2fa   :  { %v333_v19 = vsub.f32 1.0, %v332_v17  ;;  %v347_v20 = vmul.f32 %v1131_v18, %v330_v14  ;;  %vm352_vm4 = vweird.f32 %v1131_v18 }
 0x2fb   :  { %vm353_vm8 = vmor %vm351_vm7, %vm352_vm4 }
 0x2fc   :  { %v334_v21 = vmul.f32 %v1129_v16, %v333_v19  ;;  %v348_v22 = vsub.f32 1.0, %v347_v20 }
 0x2fe   :  { %v335_v24 = vadd.f32 %v1129_v16, %v334_v21  ;;  %v349_v25 = vmul.f32 %v1131_v18, %v348_v22 }
 0x300   :  { %v350_v29 = vadd.f32 %v1131_v18, %v349_v25  ;;  %v339_v31 = vsel %vm338_vm6, %v1129_v16, %v335_v24 }
 0x301   :  { %v344_v36 = vsel %vm341_vm10, %v343_v33, %v339_v31 }
 0x302   :  { %v354_v32 = vsel %vm353_vm8, %v1131_v18, %v350_v29 }
 0x303   :  { %v359_v34 = vsel %vm356_vm9, %v358_v30, %v354_v32 }
 0x304   :  { %v365_v35 = vrot.slane %v359_v34, 7 }
 0x306   :  { %v366_v37 = vsel %vm157_vm1, %v365_v35, %v344_v36 }
 0x307   :  { %370 = vrot.lane.b32.xlu2 %v366_v37, %s1240_s21  ;;  %368 = vrot.lane.b32.xlu1 %v366_v37, %s1241_s22 }
 0x361   :  { %v371_v48 = vpop.permute.xlu2 %370 }
 0x365   :  { %v378_v38 = vpop.permute.xlu0 %377 }
 0x366   :  { %v381_v39 = vrot.slane %v378_v38, 1  ;;  %v384_v42 = vmul.f32 %v378_v38, %v344_v36  ;;  %v503_v38 = vld [vmem:[#allocation2 + $0x4] sm:$0x1] }
 0x368   :  { %v385_v40 = vmul.f32 %v381_v39, %v359_v34 }
 0x36a   :  { %v388_v41 = vrot.slane %v385_v40, 7 }
 0x36c   :  { %v389_v45 = vsel %vm157_vm1, %v388_v41, %v384_v42  ;;  %v504_v42 = vld [vmem:[#allocation2 + $0xc] sm:$0x1] }
 0x379   :  { %v369_v43 = vpop.permute.xlu1 %368 }
 0x37a   :  { %v379_v44 = vmul.f32 %v369_v43, %v1531_v59 }
 0x37c   :  { %v1541_v46 = vadd.f32 %v389_v45, %v379_v44 }
 0x37e   :  { %1132 = vtanh.f32 %v1541_v46 }
 0x384   :  { %v1133_v47 = vpop.eup %1132 }
 0x385   :  { %v393_v49 = vmul.f32 %v1133_v47, %v371_v48 }
 0x387   :  { %v395_v50 = vrot.slane %v393_v49, 1  ;;  %397 = vst [vmem:[#allocation3 + $0x2] sm:$0x1] %v393_v49  ;;  %417 = vmatmul.f32.vlgmr.msrb.gmra.mxu0 %v393_v49 }
 0x389   :  { %398 = vst [vmem:[#allocation3 + $0xa] sm:$0x1] %v395_v50 }
 0x404   :  { %v418_v52 = vpop.f32.mrf.mxu0 }
 0x405   :  { %v422_v53 = vrot.slane %v418_v52, 1  ;;  %v425_v54 = vadd.f32 %v418_v52, %v399_v51 }
 0x407   :  { %v426_v56 = vadd.f32 %v422_v53, %v400_v55  ;;  %v1070_v57 = vmul.f32 -1.442695, %v425_v54 }
 0x409   :  { %1134 = vpow2.f32 %v1070_v57  ;;  %v1071_v58 = vmul.f32 -1.442695, %v426_v56 }
 0x40a   :  { %1136 = vtanh.f32 %v426_v56 }
 0x40b   :  { %1138 = vpow2.f32 %v1071_v58 }
 0x40c   :  { %1140 = vtanh.f32 %v425_v54 }
 0x40f   :  { %v1135_v59 = vpop.eup %1134 }
 0x410   :  { %v1137_v60 = vpop.eup %1136  ;;  %v433_v61 = vadd.f32 1.0, %v1135_v59 }
 0x411   :  { %v1139_v62 = vpop.eup %1138  ;;  %v478_v63 = vrot.slane %v1137_v60, 7 }
 0x412   :  { %v1141_v0 = vpop.eup %1140  ;;  %v434_v1 = vadd.f32 1.0, %v1139_v62  ;;  %1142 = vrcp.f32 %v433_v61  ;;  %vm440_vm13 = vweird.f32 %v433_v61  ;;  %v446_v14 = vand.u32 2147483648, %v433_v61 }
 0x413   :  { %v479_v2 = vsel %vm157_vm1, %v478_v63, %v1141_v0  ;;  %v444_v15 = vand.u32 2147483647, %v433_v61 }
 0x414   :  { %1144 = vrcp.f32 %v434_v1  ;;  %481 = vrot.lane.b32.xlu0 %v479_v2, %s1239_s3  ;;  %v461_v10 = vand.u32 2147483648, %v434_v1  ;;  %v459_v13 = vand.u32 2147483647, %v434_v1  ;;  %vm455_vm15 = vweird.f32 %v434_v1 }
 0x415   :  { %v447_v20 = vor.u32 1.1754944e-38, %v446_v14  ;;  %vm445_vm3 = vcmp.eq.f32.partialorder %v444_v15, 8.507059e+37 }
 0x416   :  { %v462_v17 = vor.u32 1.1754944e-38, %v461_v10  ;;  %vm460_vm2 = vcmp.eq.f32.partialorder %v459_v13, 8.507059e+37 }
 0x418   :  { %v1143_v3 = vpop.eup %1142 }
 0x419   :  { %v436_v4 = vmul.f32 %v1143_v3, %v433_v61  ;;  %vm441_vm11 = vweird.f32 %v1143_v3 }
 0x41a   :  { %v1145_v5 = vpop.eup %1144  ;;  %vm442_vm14 = vmor %vm440_vm13, %vm441_vm11 }
 0x41b   :  { %v437_v6 = vsub.f32 1.0, %v436_v4  ;;  %v451_v7 = vmul.f32 %v1145_v5, %v434_v1  ;;  %vm456_vm12 = vweird.f32 %v1145_v5 }
 0x41c   :  { %vm457_vm0 = vmor %vm455_vm15, %vm456_vm12 }
 0x41d   :  { %v438_v8 = vmul.f32 %v1143_v3, %v437_v6  ;;  %v452_v9 = vsub.f32 1.0, %v451_v7 }
 0x41f   :  { %v439_v11 = vadd.f32 %v1143_v3, %v438_v8  ;;  %v453_v12 = vmul.f32 %v1145_v5, %v452_v9 }
 0x421   :  { %v454_v16 = vadd.f32 %v1145_v5, %v453_v12  ;;  %v443_v18 = vsel %vm442_vm14, %v1143_v3, %v439_v11 }
 0x422   :  { %v448_v23 = vsel %vm445_vm3, %v447_v20, %v443_v18 }
 0x423   :  { %v458_v19 = vsel %vm457_vm0, %v1145_v5, %v454_v16 }
 0x424   :  { %v463_v21 = vsel %vm460_vm2, %v462_v17, %v458_v19 }
 0x425   :  { %v469_v22 = vrot.slane %v463_v21, 7 }
 0x427   :  { %v470_v24 = vsel %vm157_vm1, %v469_v22, %v448_v23 }
 0x428   :  { %474 = vrot.lane.b32.xlu2 %v470_v24, %s1240_s21  ;;  %472 = vrot.lane.b32.xlu1 %v470_v24, %s1241_s22 }
 0x482   :  { %v475_v35 = vpop.permute.xlu2 %474 }
 0x486   :  { %v482_v25 = vpop.permute.xlu0 %481 }
 0x487   :  { %v485_v26 = vrot.slane %v482_v25, 1  ;;  %v488_v29 = vmul.f32 %v482_v25, %v448_v23  ;;  %v607_v25 = vld [vmem:[#allocation2 + $0x5] sm:$0x1] }
 0x489   :  { %v489_v27 = vmul.f32 %v485_v26, %v463_v21 }
 0x48b   :  { %v492_v28 = vrot.slane %v489_v27, 7 }
 0x48d   :  { %v493_v32 = vsel %vm157_vm1, %v492_v28, %v488_v29  ;;  %v608_v29 = vld [vmem:[#allocation2 + $0xd] sm:$0x1] }
 0x49a   :  { %v473_v30 = vpop.permute.xlu1 %472 }
 0x49b   :  { %v483_v31 = vmul.f32 %v473_v30, %v1541_v46 }
 0x49d   :  { %v1551_v33 = vadd.f32 %v493_v32, %v483_v31 }
 0x49f   :  { %1146 = vtanh.f32 %v1551_v33 }
 0x4a5   :  { %v1147_v34 = vpop.eup %1146 }
 0x4a6   :  { %v497_v36 = vmul.f32 %v1147_v34, %v475_v35 }
 0x4a8   :  { %v499_v37 = vrot.slane %v497_v36, 1  ;;  %501 = vst [vmem:[#allocation3 + $0x3] sm:$0x1] %v497_v36  ;;  %521 = vmatmul.f32.vlgmr.msra.gmra.mxu1 %v497_v36 }
 0x4aa   :  { %502 = vst [vmem:[#allocation3 + $0xb] sm:$0x1] %v499_v37 }
 0x525   :  { %v522_v39 = vpop.f32.mrf.mxu1 }
 0x526   :  { %v526_v40 = vrot.slane %v522_v39, 1  ;;  %v529_v41 = vadd.f32 %v522_v39, %v503_v38 }
 0x528   :  { %v530_v43 = vadd.f32 %v526_v40, %v504_v42  ;;  %v1072_v44 = vmul.f32 -1.442695, %v529_v41 }
 0x52a   :  { %1148 = vpow2.f32 %v1072_v44  ;;  %v1073_v45 = vmul.f32 -1.442695, %v530_v43 }
 0x52b   :  { %1150 = vtanh.f32 %v530_v43 }
 0x52c   :  { %1152 = vpow2.f32 %v1073_v45 }
 0x52d   :  { %1154 = vtanh.f32 %v529_v41 }
 0x530   :  { %v1149_v46 = vpop.eup %1148 }
 0x531   :  { %v1151_v47 = vpop.eup %1150  ;;  %v537_v48 = vadd.f32 1.0, %v1149_v46 }
 0x532   :  { %v1153_v49 = vpop.eup %1152  ;;  %v582_v50 = vrot.slane %v1151_v47, 7 }
 0x533   :  { %v1155_v51 = vpop.eup %1154  ;;  %v538_v52 = vadd.f32 1.0, %v1153_v49  ;;  %1156 = vrcp.f32 %v537_v48  ;;  %vm544_vm6 = vweird.f32 %v537_v48  ;;  %v550_v1 = vand.u32 2147483648, %v537_v48 }
 0x534   :  { %v583_v53 = vsel %vm157_vm1, %v582_v50, %v1155_v51  ;;  %v548_v2 = vand.u32 2147483647, %v537_v48 }
 0x535   :  { %1158 = vrcp.f32 %v538_v52  ;;  %585 = vrot.lane.b32.xlu0 %v583_v53, %s1239_s3  ;;  %v565_v61 = vand.u32 2147483648, %v538_v52  ;;  %v563_v0 = vand.u32 2147483647, %v538_v52  ;;  %vm559_vm8 = vweird.f32 %v538_v52 }
 0x536   :  { %v551_v7 = vor.u32 1.1754944e-38, %v550_v1  ;;  %vm549_vm11 = vcmp.eq.f32.partialorder %v548_v2, 8.507059e+37 }
 0x537   :  { %v566_v4 = vor.u32 1.1754944e-38, %v565_v61  ;;  %vm564_vm10 = vcmp.eq.f32.partialorder %v563_v0, 8.507059e+37 }
 0x539   :  { %v1157_v54 = vpop.eup %1156 }
 0x53a   :  { %v540_v55 = vmul.f32 %v1157_v54, %v537_v48  ;;  %vm545_vm4 = vweird.f32 %v1157_v54 }
 0x53b   :  { %v1159_v56 = vpop.eup %1158  ;;  %vm546_vm7 = vmor %vm544_vm6, %vm545_vm4 }
 0x53c   :  { %v541_v57 = vsub.f32 1.0, %v540_v55  ;;  %v555_v58 = vmul.f32 %v1159_v56, %v538_v52  ;;  %vm560_vm5 = vweird.f32 %v1159_v56 }
 0x53d   :  { %vm561_vm9 = vmor %vm559_vm8, %vm560_vm5 }
 0x53e   :  { %v542_v59 = vmul.f32 %v1157_v54, %v541_v57  ;;  %v556_v60 = vsub.f32 1.0, %v555_v58 }
 0x540   :  { %v543_v62 = vadd.f32 %v1157_v54, %v542_v59  ;;  %v557_v63 = vmul.f32 %v1159_v56, %v556_v60 }
 0x542   :  { %v558_v3 = vadd.f32 %v1159_v56, %v557_v63  ;;  %v547_v5 = vsel %vm546_vm7, %v1157_v54, %v543_v62 }
 0x543   :  { %v552_v10 = vsel %vm549_vm11, %v551_v7, %v547_v5 }
 0x544   :  { %v562_v6 = vsel %vm561_vm9, %v1159_v56, %v558_v3 }
 0x545   :  { %v567_v8 = vsel %vm564_vm10, %v566_v4, %v562_v6 }
 0x546   :  { %v573_v9 = vrot.slane %v567_v8, 7 }
 0x548   :  { %v574_v11 = vsel %vm157_vm1, %v573_v9, %v552_v10 }
 0x549   :  { %578 = vrot.lane.b32.xlu2 %v574_v11, %s1240_s21  ;;  %576 = vrot.lane.b32.xlu1 %v574_v11, %s1241_s22 }
 0x5a3   :  { %v579_v22 = vpop.permute.xlu2 %578 }
 0x5a7   :  { %v586_v12 = vpop.permute.xlu0 %585 }
 0x5a8   :  { %v589_v13 = vrot.slane %v586_v12, 1  ;;  %v592_v16 = vmul.f32 %v586_v12, %v552_v10  ;;  %v711_v12 = vld [vmem:[#allocation2 + $0x6] sm:$0x1] }
 0x5aa   :  { %v593_v14 = vmul.f32 %v589_v13, %v567_v8 }
 0x5ac   :  { %v596_v15 = vrot.slane %v593_v14, 7 }
 0x5ae   :  { %v597_v19 = vsel %vm157_vm1, %v596_v15, %v592_v16  ;;  %v712_v16 = vld [vmem:[#allocation2 + $0xe] sm:$0x1] }
 0x5bb   :  { %v577_v17 = vpop.permute.xlu1 %576 }
 0x5bc   :  { %v587_v18 = vmul.f32 %v577_v17, %v1551_v33 }
 0x5be   :  { %v1561_v20 = vadd.f32 %v597_v19, %v587_v18 }
 0x5c0   :  { %1160 = vtanh.f32 %v1561_v20 }
 0x5c6   :  { %v1161_v21 = vpop.eup %1160 }
 0x5c7   :  { %v601_v23 = vmul.f32 %v1161_v21, %v579_v22 }
 0x5c9   :  { %v603_v24 = vrot.slane %v601_v23, 1  ;;  %605 = vst [vmem:[#allocation3 + $0x4] sm:$0x1] %v601_v23  ;;  %625 = vmatmul.f32.vlgmr.msrb.gmra.mxu2 %v601_v23 }
 0x5cb   :  { %606 = vst [vmem:[#allocation3 + $0xc] sm:$0x1] %v603_v24 }
 0x64c   :  { %v626_v26 = vpop.f32.mrf.mxu2 }
 0x64d   :  { %v630_v27 = vrot.slane %v626_v26, 1  ;;  %v633_v28 = vadd.f32 %v626_v26, %v607_v25 }
 0x64f   :  { %v634_v30 = vadd.f32 %v630_v27, %v608_v29  ;;  %v1074_v31 = vmul.f32 -1.442695, %v633_v28 }
 0x651   :  { %1162 = vpow2.f32 %v1074_v31  ;;  %v1075_v32 = vmul.f32 -1.442695, %v634_v30 }
 0x652   :  { %1164 = vtanh.f32 %v634_v30 }
 0x653   :  { %1166 = vpow2.f32 %v1075_v32 }
 0x654   :  { %1168 = vtanh.f32 %v633_v28 }
 0x657   :  { %v1163_v33 = vpop.eup %1162 }
 0x658   :  { %v1165_v34 = vpop.eup %1164  ;;  %v641_v35 = vadd.f32 1.0, %v1163_v33 }
 0x659   :  { %v1167_v36 = vpop.eup %1166  ;;  %v686_v37 = vrot.slane %v1165_v34, 7 }
 0x65a   :  { %v1169_v38 = vpop.eup %1168  ;;  %v642_v39 = vadd.f32 1.0, %v1167_v36  ;;  %1170 = vrcp.f32 %v641_v35  ;;  %vm648_vm14 = vweird.f32 %v641_v35  ;;  %v654_v52 = vand.u32 2147483648, %v641_v35 }
 0x65b   :  { %v687_v40 = vsel %vm157_vm1, %v686_v37, %v1169_v38  ;;  %v652_v53 = vand.u32 2147483647, %v641_v35 }
 0x65c   :  { %1172 = vrcp.f32 %v642_v39  ;;  %689 = vrot.lane.b32.xlu0 %v687_v40, %s1239_s3  ;;  %v669_v48 = vand.u32 2147483648, %v642_v39  ;;  %v667_v51 = vand.u32 2147483647, %v642_v39  ;;  %vm663_vm0 = vweird.f32 %v642_v39 }
 0x65d   :  { %v655_v58 = vor.u32 1.1754944e-38, %v654_v52  ;;  %vm653_vm4 = vcmp.eq.f32.partialorder %v652_v53, 8.507059e+37 }
 0x65e   :  { %v670_v55 = vor.u32 1.1754944e-38, %v669_v48  ;;  %vm668_vm3 = vcmp.eq.f32.partialorder %v667_v51, 8.507059e+37 }
 0x660   :  { %v1171_v41 = vpop.eup %1170 }
 0x661   :  { %v644_v42 = vmul.f32 %v1171_v41, %v641_v35  ;;  %vm649_vm12 = vweird.f32 %v1171_v41 }
 0x662   :  { %v1173_v43 = vpop.eup %1172  ;;  %vm650_vm15 = vmor %vm648_vm14, %vm649_vm12 }
 0x663   :  { %v645_v44 = vsub.f32 1.0, %v644_v42  ;;  %v659_v45 = vmul.f32 %v1173_v43, %v642_v39  ;;  %vm664_vm13 = vweird.f32 %v1173_v43 }
 0x664   :  { %vm665_vm2 = vmor %vm663_vm0, %vm664_vm13 }
 0x665   :  { %v646_v46 = vmul.f32 %v1171_v41, %v645_v44  ;;  %v660_v47 = vsub.f32 1.0, %v659_v45 }
 0x667   :  { %v647_v49 = vadd.f32 %v1171_v41, %v646_v46  ;;  %v661_v50 = vmul.f32 %v1173_v43, %v660_v47 }
 0x669   :  { %v662_v54 = vadd.f32 %v1173_v43, %v661_v50  ;;  %v651_v56 = vsel %vm650_vm15, %v1171_v41, %v647_v49 }
 0x66a   :  { %v656_v61 = vsel %vm653_vm4, %v655_v58, %v651_v56 }
 0x66b   :  { %v666_v57 = vsel %vm665_vm2, %v1173_v43, %v662_v54 }
 0x66c   :  { %v671_v59 = vsel %vm668_vm3, %v670_v55, %v666_v57 }
 0x66d   :  { %v677_v60 = vrot.slane %v671_v59, 7 }
 0x66f   :  { %v678_v62 = vsel %vm157_vm1, %v677_v60, %v656_v61 }
 0x670   :  { %682 = vrot.lane.b32.xlu2 %v678_v62, %s1240_s21  ;;  %680 = vrot.lane.b32.xlu1 %v678_v62, %s1241_s22 }
 0x6ca   :  { %v683_v9 = vpop.permute.xlu2 %682 }
 0x6ce   :  { %v690_v63 = vpop.permute.xlu0 %689 }
 0x6cf   :  { %v693_v0 = vrot.slane %v690_v63, 1  ;;  %v696_v3 = vmul.f32 %v690_v63, %v656_v61  ;;  %v815_v63 = vld [vmem:[#allocation2 + $0x7] sm:$0x1] }
 0x6d1   :  { %v697_v1 = vmul.f32 %v693_v0, %v671_v59 }
 0x6d3   :  { %v700_v2 = vrot.slane %v697_v1, 7 }
 0x6d5   :  { %v701_v6 = vsel %vm157_vm1, %v700_v2, %v696_v3  ;;  %v816_v3 = vld [vmem:[#allocation2 + $0xf] sm:$0x1] }
 0x6e2   :  { %v681_v4 = vpop.permute.xlu1 %680 }
 0x6e3   :  { %v691_v5 = vmul.f32 %v681_v4, %v1561_v20 }
 0x6e5   :  { %v1571_v7 = vadd.f32 %v701_v6, %v691_v5 }
 0x6e7   :  { %1174 = vtanh.f32 %v1571_v7 }
 0x6ed   :  { %v1175_v8 = vpop.eup %1174 }
 0x6ee   :  { %v705_v10 = vmul.f32 %v1175_v8, %v683_v9 }
 0x6f0   :  { %v707_v11 = vrot.slane %v705_v10, 1  ;;  %709 = vst [vmem:[#allocation3 + $0x5] sm:$0x1] %v705_v10  ;;  %729 = vmatmul.f32.vlgmr.msra.gmra.mxu3 %v705_v10 }
 0x6f2   :  { %710 = vst [vmem:[#allocation3 + $0xd] sm:$0x1] %v707_v11 }
 0x773   :  { %v730_v13 = vpop.f32.mrf.mxu3 }
 0x774   :  { %v734_v14 = vrot.slane %v730_v13, 1  ;;  %v737_v15 = vadd.f32 %v730_v13, %v711_v12 }
 0x776   :  { %v738_v17 = vadd.f32 %v734_v14, %v712_v16  ;;  %v1076_v18 = vmul.f32 -1.442695, %v737_v15 }
 0x778   :  { %1176 = vpow2.f32 %v1076_v18  ;;  %v1077_v19 = vmul.f32 -1.442695, %v738_v17 }
 0x779   :  { %1178 = vtanh.f32 %v738_v17 }
 0x77a   :  { %1180 = vpow2.f32 %v1077_v19 }
 0x77b   :  { %1182 = vtanh.f32 %v737_v15 }
 0x77e   :  { %v1177_v20 = vpop.eup %1176 }
 0x77f   :  { %v1179_v21 = vpop.eup %1178  ;;  %v745_v22 = vadd.f32 1.0, %v1177_v20 }
 0x780   :  { %v1181_v23 = vpop.eup %1180  ;;  %v790_v24 = vrot.slane %v1179_v21, 7 }
 0x781   :  { %v1183_v25 = vpop.eup %1182  ;;  %v746_v26 = vadd.f32 1.0, %v1181_v23  ;;  %1184 = vrcp.f32 %v745_v22  ;;  %vm752_vm7 = vweird.f32 %v745_v22  ;;  %v758_v39 = vand.u32 2147483648, %v745_v22 }
 0x782   :  { %v791_v27 = vsel %vm157_vm1, %v790_v24, %v1183_v25  ;;  %v756_v40 = vand.u32 2147483647, %v745_v22 }
 0x783   :  { %1186 = vrcp.f32 %v746_v26  ;;  %793 = vrot.lane.b32.xlu0 %v791_v27, %s1239_s3  ;;  %v773_v35 = vand.u32 2147483648, %v746_v26  ;;  %v771_v38 = vand.u32 2147483647, %v746_v26  ;;  %vm767_vm9 = vweird.f32 %v746_v26 }
 0x784   :  { %v759_v45 = vor.u32 1.1754944e-38, %v758_v39  ;;  %vm757_vm12 = vcmp.eq.f32.partialorder %v756_v40, 8.507059e+37  ;;  %v936_v39 = vld [vmem:[%s1664_s4 + $0x68] sm:$0xff]  ;;  %v935_v40 = vld [vmem:[%s1664_s4 + $0x60] sm:$0xff] }
 0x785   :  { %v774_v42 = vor.u32 1.1754944e-38, %v773_v35  ;;  %vm772_vm11 = vcmp.eq.f32.partialorder %v771_v38, 8.507059e+37  ;;  %v937_v38 = vld [vmem:[%s1664_s4 + $0x70] sm:$0xff] }
 0x787   :  { %v1185_v28 = vpop.eup %1184 }
 0x788   :  { %v748_v29 = vmul.f32 %v1185_v28, %v745_v22  ;;  %vm753_vm5 = vweird.f32 %v1185_v28 }
 0x789   :  { %v1187_v30 = vpop.eup %1186  ;;  %vm754_vm8 = vmor %vm752_vm7, %vm753_vm5 }
 0x78a   :  { %v749_v31 = vsub.f32 1.0, %v748_v29  ;;  %v763_v32 = vmul.f32 %v1187_v30, %v746_v26  ;;  %vm768_vm6 = vweird.f32 %v1187_v30 }
 0x78b   :  { %vm769_vm10 = vmor %vm767_vm9, %vm768_vm6 }
 0x78c   :  { %v750_v33 = vmul.f32 %v1185_v28, %v749_v31  ;;  %v764_v34 = vsub.f32 1.0, %v763_v32 }
 0x78e   :  { %v751_v36 = vadd.f32 %v1185_v28, %v750_v33  ;;  %v765_v37 = vmul.f32 %v1187_v30, %v764_v34 }
 0x790   :  { %v766_v41 = vadd.f32 %v1187_v30, %v765_v37  ;;  %v755_v43 = vsel %vm754_vm8, %v1185_v28, %v751_v36  ;;  %v938_v37 = vld [vmem:[%s1664_s4 + $0x78] sm:$0xff] }
 0x791   :  { %v760_v48 = vsel %vm757_vm12, %v759_v45, %v755_v43  ;;  %943 = vmatpush.msrb.mxu1 %v938_v37  ;;  %v932_v43 = vld [vmem:[%s1664_s4 + $0x48] sm:$0xff]  ;;  %v930_v45 = vld [vmem:[%s1664_s4 + $0x38] sm:$0xff] }
 0x792   :  { %v770_v44 = vsel %vm769_vm10, %v1187_v30, %v766_v41  ;;  %v934_v41 = vld [vmem:[%s1664_s4 + $0x58] sm:$0xff] }
 0x793   :  { %v775_v46 = vsel %vm772_vm11, %v774_v42, %v770_v44  ;;  %944 = vmatpush.msrb.mxu1 %v937_v38  ;;  %v933_v42 = vld [vmem:[%s1664_s4 + $0x50] sm:$0xff]  ;;  %v931_v44 = vld [vmem:[%s1664_s4 + $0x40] sm:$0xff] }
 0x794   :  { %v781_v47 = vrot.slane %v775_v46, 7 }
 0x795   :  { %945 = vmatpush.msrb.mxu1 %v936_v39 }
 0x796   :  { %v782_v49 = vsel %vm157_vm1, %v781_v47, %v760_v48  ;;  %v928_v47 = vld [vmem:[%s1664_s4 + $0x28] sm:$0xff] }
 0x797   :  { %786 = vrot.lane.b32.xlu2 %v782_v49, %s1240_s21  ;;  %784 = vrot.lane.b32.xlu1 %v782_v49, %s1241_s22  ;;  %v926_v49 = vld [vmem:[%s1664_s4 + $0x18] sm:$0xff] }
 0x798   :  { %946 = vmatpush.msrb.mxu1 %v935_v40 }
 0x79a   :  { %947 = vmatpush.msrb.mxu1 %v934_v41 }
 0x79c   :  { %948 = vmatpush.msrb.mxu1 %v933_v42 }
 0x79e   :  { %949 = vmatpush.msrb.mxu1 %v932_v43 }
 0x7a0   :  { %950 = vmatpush.msrb.mxu1 %v931_v44 }
 0x7a2   :  { %951 = vmatpush.msrb.mxu1 %v930_v45 }
 0x7f1   :  { %v787_v60 = vpop.permute.xlu2 %786 }
 0x7f5   :  { %v794_v50 = vpop.permute.xlu0 %793 }
 0x7f6   :  { %v797_v51 = vrot.slane %v794_v50, 1  ;;  %v800_v54 = vmul.f32 %v794_v50, %v760_v48  ;;  %v927_v48 = vld [vmem:[%s1664_s4 + $0x20] sm:$0xff]  ;;  %v925_v50 = vld [vmem:[%s1664_s4 + $0x10] sm:$0xff] }
 0x7f8   :  { %v801_v52 = vmul.f32 %v797_v51, %v775_v46  ;;  %v929_v46 = vld [vmem:[%s1664_s4 + $0x30] sm:$0xff] }
 0x7f9   :  { %952 = vmatpush.msrb.mxu1 %v929_v46 }
 0x7fa   :  { %v804_v53 = vrot.slane %v801_v52, 7  ;;  %v924_v52 = vld [vmem:[%s1664_s4 + $0x8] sm:$0xff] }
 0x7fb   :  { %953 = vmatpush.msrb.mxu1 %v928_v47 }
 0x7fc   :  { %v805_v57 = vsel %vm157_vm1, %v804_v53, %v800_v54  ;;  %v923_v53 = vld [vmem:[%s1664_s4] sm:$0xff] }
 0x7fd   :  { %954 = vmatpush.msrb.mxu1 %v927_v48 }
 0x7ff   :  { %955 = vmatpush.msrb.mxu1 %v926_v49 }
 0x801   :  { %956 = vmatpush.msrb.mxu1 %v925_v50 }
 0x803   :  { %957 = vmatpush.msrb.mxu1 %v924_v52 }
 0x805   :  { %958 = vmatpush.msrb.mxu1 %v923_v53 }
 0x809   :  { %v785_v55 = vpop.permute.xlu1 %784 }
 0x80a   :  { %v795_v56 = vmul.f32 %v785_v55, %v1571_v7 }
 0x80c   :  { %v1581_v58 = vadd.f32 %v805_v57, %v795_v56 }
 0x80e   :  { %1188 = vtanh.f32 %v1581_v58 }
 0x814   :  { %v1189_v59 = vpop.eup %1188 }
 0x815   :  { %v809_v61 = vmul.f32 %v1189_v59, %v787_v60  ;;  %v971_v60 = vld [vmem:[%s1666_s6 + $0x18] sm:$0xff] }
 0x816   :  { %995 = vmatpush.msra.mxu2 %v971_v60 }
 0x817   :  { %v811_v62 = vrot.slane %v809_v61, 1  ;;  %813 = vst [vmem:[#allocation3 + $0x6] sm:$0x1] %v809_v61  ;;  %833 = vmatmul.f32.vlgmr.msra.gmra.mxu0 %v809_v61  ;;  %v970_v61 = vld [vmem:[%s1666_s6 + $0x10] sm:$0xff] }
 0x818   :  { %996 = vmatpush.msra.mxu2 %v970_v61 }
 0x819   :  { %814 = vst [vmem:[#allocation3 + $0xe] sm:$0x1] %v811_v62 }
 0x894   :  { %v834_v0 = vpop.f32.mrf.mxu0 }
 0x895   :  { %v838_v1 = vrot.slane %v834_v0, 1  ;;  %v841_v2 = vadd.f32 %v834_v0, %v815_v63 }
 0x897   :  { %v842_v4 = vadd.f32 %v838_v1, %v816_v3  ;;  %v1078_v5 = vmul.f32 -1.442695, %v841_v2 }
 0x899   :  { %1190 = vpow2.f32 %v1078_v5  ;;  %v1079_v6 = vmul.f32 -1.442695, %v842_v4 }
 0x89a   :  { %1192 = vtanh.f32 %v842_v4 }
 0x89b   :  { %1194 = vpow2.f32 %v1079_v6 }
 0x89c   :  { %1196 = vtanh.f32 %v841_v2 }
 0x89f   :  { %v1191_v7 = vpop.eup %1190 }
 0x8a0   :  { %v1193_v8 = vpop.eup %1192  ;;  %v849_v9 = vadd.f32 1.0, %v1191_v7 }
 0x8a1   :  { %v1195_v10 = vpop.eup %1194  ;;  %v894_v11 = vrot.slane %v1193_v8, 7 }
 0x8a2   :  { %v1197_v12 = vpop.eup %1196  ;;  %v850_v13 = vadd.f32 1.0, %v1195_v10  ;;  %1198 = vrcp.f32 %v849_v9  ;;  %vm856_vm15 = vweird.f32 %v849_v9  ;;  %v862_v26 = vand.u32 2147483648, %v849_v9  ;;  %v1090_v10 = vld [vmem:[%s1665_s5] ss:$0 sm:$0xff]  ;;  %s1242_s5 = smov [#allocation4]  }
 0x8a3   :  { %v895_v14 = vsel %vm157_vm1, %v894_v11, %v1197_v12  ;;  %v860_v27 = vand.u32 2147483647, %v849_v9 }
 0x8a4   :  { %1200 = vrcp.f32 %v850_v13  ;;  %897 = vrot.lane.b32.xlu0 %v895_v14, %s1239_s3  ;;  %v877_v22 = vand.u32 2147483648, %v850_v13  ;;  %v875_v25 = vand.u32 2147483647, %v850_v13  ;;  %vm871_vm2 = vweird.f32 %v850_v13 }
 0x8a5   :  { %v863_v32 = vor.u32 1.1754944e-38, %v862_v26  ;;  %vm861_vm5 = vcmp.eq.f32.partialorder %v860_v27, 8.507059e+37 }
 0x8a6   :  { %v878_v29 = vor.u32 1.1754944e-38, %v877_v22  ;;  %vm876_vm4 = vcmp.eq.f32.partialorder %v875_v25, 8.507059e+37 }
 0x8a8   :  { %v1199_v15 = vpop.eup %1198 }
 0x8a9   :  { %v852_v16 = vmul.f32 %v1199_v15, %v849_v9  ;;  %vm857_vm13 = vweird.f32 %v1199_v15  ;;  %v968_v9 = vld [vmem:[%s1666_s6] sm:$0xff] }
 0x8aa   :  { %v1201_v17 = vpop.eup %1200  ;;  %vm858_vm0 = vmor %vm856_vm15, %vm857_vm13 }
 0x8ab   :  { %v853_v18 = vsub.f32 1.0, %v852_v16  ;;  %v867_v19 = vmul.f32 %v1201_v17, %v850_v13  ;;  %vm872_vm14 = vweird.f32 %v1201_v17 }
 0x8ac   :  { %vm873_vm3 = vmor %vm871_vm2, %vm872_vm14 }
 0x8ad   :  { %v854_v20 = vmul.f32 %v1199_v15, %v853_v18  ;;  %v868_v21 = vsub.f32 1.0, %v867_v19 }
 0x8af   :  { %v855_v23 = vadd.f32 %v1199_v15, %v854_v20  ;;  %v869_v24 = vmul.f32 %v1201_v17, %v868_v21 }
 0x8b1   :  { %v870_v28 = vadd.f32 %v1201_v17, %v869_v24  ;;  %v859_v30 = vsel %vm858_vm0, %v1199_v15, %v855_v23 }
 0x8b2   :  { %v864_v35 = vsel %vm861_vm5, %v863_v32, %v859_v30 }
 0x8b3   :  { %v874_v31 = vsel %vm873_vm3, %v1201_v17, %v870_v28  ;;  %v1091_v17 = vld [vmem:[%s1667_s7] ss:$0 sm:$0xff] }
 0x8b4   :  { %v879_v33 = vsel %vm876_vm4, %v878_v29, %v874_v31 }
 0x8b5   :  { %v885_v34 = vrot.slane %v879_v33, 7 }
 0x8b7   :  { %v886_v36 = vsel %vm157_vm1, %v885_v34, %v864_v35 }
 0x8b8   :  { %890 = vrot.lane.b32.xlu2 %v886_v36, %s1240_s21  ;;  %888 = vrot.lane.b32.xlu1 %v886_v36, %s1241_s22 }
 0x912   :  { %v891_v2 = vpop.permute.xlu2 %890 }
 0x916   :  { %v898_v51 = vpop.permute.xlu0 %897 }
 0x917   :  { %v901_v54 = vrot.slane %v898_v51, 1  ;;  %v904_v57 = vmul.f32 %v898_v51, %v864_v35 }
 0x919   :  { %v905_v55 = vmul.f32 %v901_v54, %v879_v33 }
 0x91b   :  { %v908_v56 = vrot.slane %v905_v55, 7 }
 0x91d   :  { %v909_v63 = vsel %vm157_vm1, %v908_v56, %v904_v57  ;;  %vm976_vm1 = vcmask 261120  }
 0x92a   :  { %v889_v59 = vpop.permute.xlu1 %888 }
 0x92b   :  { %v899_v62 = vmul.f32 %v889_v59, %v1581_v58  ;;  %v969_v58 = vld [vmem:[%s1666_s6 + $0x8] sm:$0xff]  ;;  %s1048_s6 = sshll.u32 %s1242_s5, 4  ;;  %s1049_s6 = int_to_ptr.vmem [resolvable:$true] %s1048_s6 }
 0x92c   :  { %997 = vmatpush.msra.mxu2 %v969_v58 }
 0x92d   :  { %v911_v0 = vadd.f32 %v909_v63, %v899_v62 }
 0x92e   :  { %998 = vmatpush.msra.mxu2 %v968_v9 }
 0x92f   :  { %1202 = vtanh.f32 %v911_v0 }
 0x935   :  { %v1203_v1 = vpop.eup %1202 }
 0x936   :  { %v913_v3 = vmul.f32 %v1203_v1, %v891_v2 }
 0x938   :  { %v915_v4 = vrot.slane %v913_v3, 1  ;;  %917 = vst [vmem:[#allocation3 + $0x7] sm:$0x1] %v913_v3 }
 0x93a   :  { %918 = vst [vmem:[#allocation3 + $0xf] sm:$0x1] %v915_v4 }
 0x93f   :  { %v919_v5 = vld [vmem:[#allocation3] sm:$0xff] }
 0x940   :  { %v921_v6 = vmax.f32 %v919_v5, 0.0 }
 0x941   :  { %v920_v7 = vld [vmem:[#allocation3 + $0x8] sm:$0xff] }
 0x942   :  { %959 = vmatmul.f32.vlgmr.msrb.gmra.mxu1 %v921_v6  ;;  %v922_v8 = vmax.f32 %v920_v7, 0.0 }
 0x94a   :  { %962 = vmatmul.f32.gmra.mxu1 %v922_v8 }
 0x9bf   :  { %v960_v11 = vpop.f32.mrf.mxu1 }
 0x9c0   :  { %v961_v12 = vadd.f32 %v1090_v10, %v960_v11 }
 0x9c2   :  { %v966_v13 = vmax.f32 %v961_v12, 0.0 }
 0x9c4   :  { %1080 = vmatmul.msk.f32.vlgmr.msra.gmra.mxu2 %vm976_vm1, %v966_v13 }
 0x9c7   :  { %v963_v14 = vpop.f32.mrf.mxu1 }
 0x9c8   :  { %v964_v15 = vadd.f32 %v1090_v10, %v963_v14 }
 0x9ca   :  { %v967_v16 = vmax.f32 %v964_v15, 0.0 }
 0x9cc   :  { %1081 = vmatmul.msk.f32.gmra.mxu2 %vm976_vm1, %v967_v16 }
 0xa47   :  { %v1000_v18 = vpop.f32.mrf.mxu2 }
 0xa48   :  { %v1001_v19 = vadd.f32 %v1091_v17, %v1000_v18 }
 0xa4a   :  { %v1006_v20 = vrot.slane %v1001_v19, 4 }
 0xa4c   :  { %v1007_v21 = vmax.f32 %v1001_v19, %v1006_v20 }
 0xa4e   :  { %v1008_v22 = vrot.slane %v1007_v21, 2 }
 0xa4f   :  { %v1003_v23 = vpop.f32.mrf.mxu2 }
 0xa50   :  { %v1009_v24 = vmax.f32 %v1007_v21, %v1008_v22  ;;  %v1004_v25 = vadd.f32 %v1091_v17, %v1003_v23 }
 0xa52   :  { %v1010_v26 = vrot.slane %v1009_v24, 1  ;;  %v1012_v27 = vrot.slane %v1004_v25, 4 }
 0xa54   :  { %v1011_v28 = vmax.f32 %v1009_v24, %v1010_v26  ;;  %v1013_v29 = vmax.f32 %v1004_v25, %v1012_v27 }
 0xa56   :  { %v1018_v30 = vsub.f32 %v1001_v19, %v1011_v28  ;;  %v1014_v31 = vrot.slane %v1013_v29, 2 }
 0xa58   :  { %v1020_v32 = vmul.f32 1.442695, %v1018_v30  ;;  %v1015_v33 = vmax.f32 %v1013_v29, %v1014_v31 }
 0xa5a   :  { %1204 = vpow2.f32 %v1020_v32  ;;  %v1016_v34 = vrot.slane %v1015_v33, 1 }
 0xa5c   :  { %v1017_v35 = vmax.f32 %v1015_v33, %v1016_v34 }
 0xa5e   :  { %v1019_v36 = vsub.f32 %v1004_v25, %v1017_v35 }
 0xa60   :  { %v1205_v37 = vpop.eup %1204  ;;  %v1022_v38 = vmul.f32 1.442695, %v1019_v36 }
 0xa61   :  { %v1024_v39 = vrot.slane %v1205_v37, 4 }
 0xa62   :  { %1206 = vpow2.f32 %v1022_v38 }
 0xa63   :  { %v1025_v40 = vadd.f32 %v1205_v37, %v1024_v39 }
 0xa65   :  { %v1026_v41 = vrot.slane %v1025_v40, 2 }
 0xa67   :  { %v1027_v42 = vadd.f32 %v1026_v41, %v1025_v40 }
 0xa68   :  { %v1207_v43 = vpop.eup %1206 }
 0xa69   :  { %v1028_v44 = vrot.slane %v1027_v42, 1  ;;  %v1030_v45 = vrot.slane %v1207_v43, 4 }
 0xa6b   :  { %v1029_v46 = vadd.f32 %v1028_v44, %v1027_v42  ;;  %v1031_v47 = vadd.f32 %v1207_v43, %v1030_v45 }
 0xa6d   :  { %1208 = vlog2.f32 %v1029_v46  ;;  %v1032_v48 = vrot.slane %v1031_v47, 2 }
 0xa6f   :  { %v1033_v49 = vadd.f32 %v1032_v48, %v1031_v47 }
 0xa71   :  { %v1034_v50 = vrot.slane %v1033_v49, 1 }
 0xa73   :  { %v1209_v51 = vpop.eup %1208  ;;  %v1035_v52 = vadd.f32 %v1034_v50, %v1033_v49 }
 0xa74   :  { %v1037_v53 = vmul.f32 0.6931472, %v1209_v51 }
 0xa75   :  { %1210 = vlog2.f32 %v1035_v52 }
 0xa76   :  { %v1040_v54 = vsub.f32 %v1018_v30, %v1037_v53 }
 0xa78   :  { %1042 = vst [vmem:[#allocation4] sm:$0xff] %v1040_v54 }
 0xa7b   :  { %v1211_v55 = vpop.eup %1210 }
 0xa7c   :  { %v1039_v56 = vmul.f32 0.6931472, %v1211_v55 }
 0xa7e   :  { %v1041_v57 = vsub.f32 %v1019_v36, %v1039_v56 }
 0xa80   :  { %1043 = vst [vmem:[#allocation4 + $0x8] sm:$0xff] %v1041_v57 }
 0xa81   :  { %1056 = dma.vmem_to_hbm [thread:$0]  %s1049_s6, 256, %s1051_s18, [#allocation5], %s1243_s1, %s1243_s1, %s1244_s19  }
 0xa82   :  { %1236 = dma.done.wait [#allocation5], 256  }
 0xa83   :  { %1237 = vsyncadd [#allocation5], 4294967040 }
 0xa84   :  { %1061 = vsyncpa [#allocation5], 1 }

</bundles_post_ra>
